<compile_context>
chip_gen: v7x
topology: tpu7x:2x2x1
jax: 0.10.0
libtpu: 0.0.40
codegen_flags: <defaults>
</compile_context>

<pallas_src>
import functools
import math

import jax
import jax.numpy as jnp
from jax.experimental import pallas as pl
from jax.experimental.pallas import tpu as pltpu


# -----------------------------------------------------------------------------
# Tiling configuration
# -----------------------------------------------------------------------------
# Tile targets sized so that double-buffered input tiles + accumulator stay
# well inside v7x's 64 MiB physical VMEM while still being large enough
# (>=512 on the lane dim) to reach ~85% of HBM roofline on v5e/v6e.
_TM, _TN, _TK = 256, 512, 512
_VMEM_LIMIT = 64 * 1024 * 1024


def _fit_tile(dim, target, align):
    """Largest aligned tile <= target that evenly divides dim (else full dim)."""
    if dim <= target:
        return dim
    t = (target // align) * align
    while t >= align:
        if dim % t == 0:
            return t
        t -= align
    return dim  # fall back to the full extent (always a legal block)


# -----------------------------------------------------------------------------
# In-kernel math helpers
# -----------------------------------------------------------------------------
def _erf_f32(x):
    """f32 erf rational approximation (XLA's ErfImpl32 coefficients)."""
    x = jnp.clip(x, -4.0, 4.0)
    x2 = x * x
    alpha = (-2.72614225801306e-10, 2.77068142495902e-08, -2.10102402082508e-06,
             -5.69250639462346e-05, -7.34990630326855e-04, -2.95459980854025e-03,
             -1.60960333262415e-02)
    beta = (-1.45660718464996e-05, -2.13374055278905e-04, -1.68282697438203e-03,
            -7.37332916720468e-03, -1.42647390514189e-02)
    p = jnp.full_like(x2, alpha[0])
    for a in alpha[1:]:
        p = p * x2 + a
    q = jnp.full_like(x2, beta[0])
    for b in beta[1:]:
        q = q * x2 + b
    return x * p / q


def _gelu_exact(x):
    # nn.GELU() default = exact erf form
    return 0.5 * x * (1.0 + _erf_f32(x * (1.0 / math.sqrt(2.0))))


# -----------------------------------------------------------------------------
# Pallas kernels
# -----------------------------------------------------------------------------
def _linear_kernel(*refs, activation, has_pos):
    # Tiled matmul: grid = (M/tm, N/tn, K/tk); K is innermost ("arbitrary").
    if has_pos:
        x_ref, w_ref, b_ref, pos_ref, o_ref, acc_ref = refs
    else:
        x_ref, w_ref, b_ref, o_ref, acc_ref = refs
        pos_ref = None

    # All program_id reads happen at the kernel top level (never inside a
    # pl.when body) so the cond branches only close over ordinary values.
    k = pl.program_id(2)
    k_last = pl.num_programs(2) - 1
    tm, tn = o_ref.shape
    col_base = pl.program_id(1) * tn if has_pos else None

    @pl.when(k == 0)
    def _():
        acc_ref[...] = jnp.zeros_like(acc_ref)

    acc_ref[...] += jnp.dot(x_ref[...], w_ref[...],
                            preferred_element_type=jnp.float32)

    @pl.when(k == k_last)
    def _():
        y = acc_ref[...] + b_ref[...]
        if activation == "gelu":
            y = _gelu_exact(y)
        if has_pos:
            # fused `x[:, :, 0] += linspace(0, S, S)` — add pos only to global
            # output column 0 of this tile.
            cols = (jax.lax.broadcasted_iota(jnp.int32, (tm, tn), 1) + col_base)
            y = y + jnp.where(cols == 0, pos_ref[...], 0.0)
        o_ref[...] = y


def _linear_ln_res_kernel(x_ref, w_ref, b_ref, res_ref, g_ref, beta_ref,
                          o_ref, acc_ref, *, eps):
    # out = res + LayerNorm(x @ w + b); LN over the full output row (N = d_model),
    # so N is un-tiled and the LN runs in the matmul epilogue.
    k = pl.program_id(1)
    k_last = pl.num_programs(1) - 1

    @pl.when(k == 0)
    def _():
        acc_ref[...] = jnp.zeros_like(acc_ref)

    acc_ref[...] += jnp.dot(x_ref[...], w_ref[...],
                            preferred_element_type=jnp.float32)

    @pl.when(k == k_last)
    def _():
        y = acc_ref[...] + b_ref[...]
        mean = jnp.mean(y, axis=-1, keepdims=True)
        cent = y - mean
        var = jnp.mean(cent * cent, axis=-1, keepdims=True)   # biased (torch)
        yn = cent * jax.lax.rsqrt(var + eps)
        o_ref[...] = res_ref[...] + yn * g_ref[...] + beta_ref[...]


def _mhsa_kernel(qkv_ref, o_ref, *, d_head):
    # qkv_ref: (3, 1, H, S, Dh) for one batch element (all heads at once).
    inv_sqrt_dk = 1.0 / math.sqrt(float(d_head))
    q = qkv_ref[0, 0] * inv_sqrt_dk      # scale folded into q (S*Dh vs S*S work)
    k = qkv_ref[1, 0]
    v = qkv_ref[2, 0]
    s = jnp.einsum('hqd,hkd->hqk', q, k, preferred_element_type=jnp.float32)
    # softmax over the last axis (no causal mask — matches the reference module)
    s = s - jnp.max(s, axis=-1, keepdims=True)
    p = jnp.exp(s)
    denom = jnp.sum(p, axis=-1, keepdims=True)
    p = p / denom
    o_ref[0] = jnp.einsum('hqk,hkd->hqd', p, v,
                          preferred_element_type=jnp.float32)


# -----------------------------------------------------------------------------
# Pallas wrappers
# -----------------------------------------------------------------------------
def linear(x, w, b, *, activation=None, pos_col=None):
    """Tiled y = act(x @ w + b) (+ optional fused positional add on column 0)."""
    M, K = x.shape
    N = w.shape[1]
    tm = _fit_tile(M, _TM, 8)
    tn = _fit_tile(N, _TN, 128)
    tk = _fit_tile(K, _TK, 128)
    grid = (M // tm, N // tn, K // tk)

    in_specs = [
        pl.BlockSpec((tm, tk), lambda i, j, k: (i, k)),
        pl.BlockSpec((tk, tn), lambda i, j, k: (k, j)),
        pl.BlockSpec((1, tn), lambda i, j, k: (0, j)),
    ]
    operands = [x, w, b]
    if pos_col is not None:
        in_specs.append(pl.BlockSpec((tm, 1), lambda i, j, k: (i, 0)))
        operands.append(pos_col)

    kernel = functools.partial(_linear_kernel, activation=activation,
                               has_pos=pos_col is not None)
    return pl.pallas_call(
        kernel,
        out_shape=jax.ShapeDtypeStruct((M, N), jnp.float32),
        grid=grid,
        in_specs=in_specs,
        out_specs=pl.BlockSpec((tm, tn), lambda i, j, k: (i, j)),
        scratch_shapes=[pltpu.VMEM((tm, tn), jnp.float32)],
        compiler_params=pltpu.CompilerParams(
            dimension_semantics=("parallel", "parallel", "arbitrary"),
            vmem_limit_bytes=_VMEM_LIMIT),
    )(*operands)


def linear_ln_residual(x, w, b, res, gamma, beta, *, eps=1e-5):
    """Fused out = res + LayerNorm(x @ w + b); N (=d_model) kept whole for LN."""
    M, K = x.shape
    N = w.shape[1]
    tm = _fit_tile(M, _TM, 8)
    tk = _fit_tile(K, _TK, 128)
    grid = (M // tm, K // tk)
    return pl.pallas_call(
        functools.partial(_linear_ln_res_kernel, eps=eps),
        out_shape=jax.ShapeDtypeStruct((M, N), jnp.float32),
        grid=grid,
        in_specs=[
            pl.BlockSpec((tm, tk), lambda i, k: (i, k)),
            pl.BlockSpec((tk, N), lambda i, k: (k, 0)),
            pl.BlockSpec((1, N), lambda i, k: (0, 0)),
            pl.BlockSpec((tm, N), lambda i, k: (i, 0)),   # residual
            pl.BlockSpec((1, N), lambda i, k: (0, 0)),    # ln gamma
            pl.BlockSpec((1, N), lambda i, k: (0, 0)),    # ln beta
        ],
        out_specs=pl.BlockSpec((tm, N), lambda i, k: (i, 0)),
        scratch_shapes=[pltpu.VMEM((tm, N), jnp.float32)],
        compiler_params=pltpu.CompilerParams(
            dimension_semantics=("parallel", "arbitrary"),
            vmem_limit_bytes=_VMEM_LIMIT),
    )(x, w, b, res, gamma, beta)


def mhsa(qkv, *, B, S, n_head, d_model):
    """Multi-head attention over the fused QKV activation (B*S, 3*D)."""
    H = n_head
    d_head = d_model // n_head
    # single layout shuffle for all of q/k/v: (B*S, 3D) -> (3, B, H, S, Dh)
    qkv5 = qkv.reshape(B, S, 3, H, d_head).transpose(2, 0, 3, 1, 4)
    out = pl.pallas_call(
        functools.partial(_mhsa_kernel, d_head=d_head),
        out_shape=jax.ShapeDtypeStruct((B, H, S, d_head), jnp.float32),
        grid=(B,),
        in_specs=[pl.BlockSpec((3, 1, H, S, d_head),
                               lambda b: (0, b, 0, 0, 0))],
        out_specs=pl.BlockSpec((1, H, S, d_head), lambda b: (b, 0, 0, 0)),
        compiler_params=pltpu.CompilerParams(
            dimension_semantics=("parallel",),
            vmem_limit_bytes=_VMEM_LIMIT),
    )(qkv5)
    # (B, H, S, Dh) -> (B*S, D) for the combine_heads projection
    return out.transpose(0, 2, 1, 3).reshape(B * S, d_model)


def linear_lane_padded(x, w, b):
    """Linear whose output lane dim is padded to a multiple of 128 (lane-dense
    stores), then sliced back in the wrapper."""
    N = w.shape[1]
    Np = ((N + 127) // 128) * 128
    if Np != N:
        w = jnp.pad(w, ((0, 0), (0, Np - N)))
        b = jnp.pad(b, ((0, 0), (0, Np - N)))
    y = linear(x, w, b)
    return y[:, :N] if Np != N else y


# -----------------------------------------------------------------------------
# Parameter init (deterministic; torch nn.Linear default U(-1/sqrt(fan_in), +)).
# Weights are stored as (fan_in, fan_out) == W^T of the torch layout.
# -----------------------------------------------------------------------------
def init_linear(key, fan_in, fan_out):
    kw, kb = jax.random.split(key)
    bound = 1.0 / math.sqrt(fan_in)
    w = jax.random.uniform(kw, (fan_in, fan_out), jnp.float32, -bound, bound)
    b = jax.random.uniform(kb, (1, fan_out), jnp.float32, -bound, bound)
    return w, b


def init_params(key, n_inputs, n_outputs, n_layers, d_model, n_head):
    d_ff = 4 * d_model
    params = {}
    key, k_embed, k_out = jax.random.split(key, 3)
    params["embed_w"], params["embed_b"] = init_linear(k_embed, n_inputs, d_model)
    params["out_w"], params["out_b"] = init_linear(k_out, d_model, n_outputs)
    layers = []
    for _ in range(n_layers):
        key, kq, kk, kv, ko, k1, k2 = jax.random.split(key, 7)
        lp = {}
        wq, bq = init_linear(kq, d_model, d_model)
        wk, bk = init_linear(kk, d_model, d_model)
        wv, bv = init_linear(kv, d_model, d_model)
        lp["wqkv"] = jnp.concatenate([wq, wk, wv], axis=1)   # fused QKV weight
        lp["bqkv"] = jnp.concatenate([bq, bk, bv], axis=1)
        lp["wo"], lp["bo"] = init_linear(ko, d_model, d_model)
        lp["w1"], lp["b1"] = init_linear(k1, d_model, d_ff)
        lp["w2"], lp["b2"] = init_linear(k2, d_ff, d_model)
        # LayerNorm defaults: weight=1, bias=0
        lp["ln1_g"] = jnp.ones((1, d_model), jnp.float32)
        lp["ln1_b"] = jnp.zeros((1, d_model), jnp.float32)
        lp["ln2_g"] = jnp.ones((1, d_model), jnp.float32)
        lp["ln2_b"] = jnp.zeros((1, d_model), jnp.float32)
        layers.append(lp)
    params["layers"] = layers
    return params


# -----------------------------------------------------------------------------
# Forward pass (mirrors DecoderOnly.forward)
# -----------------------------------------------------------------------------
def decoder_only_forward(x, params, *, d_model, n_head, n_outputs):
    B, S, n_in = x.shape
    M = B * S

    # positional term: torch.linspace(0, S, S) added to channel 0 — fused into
    # the embed matmul's epilogue as a per-row column-0 add.
    pos = jnp.linspace(0.0, float(S), S, dtype=jnp.float32)
    pos_col = jnp.tile(pos, B)[:, None]                        # (B*S, 1)

    # embed (+ fused positional add)
    h = linear(x.reshape(M, n_in), params["embed_w"], params["embed_b"],
               pos_col=pos_col)                                # (M, D)

    for lp in params["layers"]:
        # --- MultiHeadSelfAttention (fused QKV projection) ---
        qkv = linear(h, lp["wqkv"], lp["bqkv"])                # (M, 3D)
        attn = mhsa(qkv, B=B, S=S, n_head=n_head, d_model=d_model)  # (M, D)
        # x = x + norm1(combine_heads(attn))  — matmul + LN + residual fused
        h = linear_ln_residual(attn, lp["wo"], lp["bo"],
                               h, lp["ln1_g"], lp["ln1_b"])

        # --- Feedforward: fc1 + GELU fused; fc2 + LN + residual fused ---
        ff = linear(h, lp["w1"], lp["b1"], activation="gelu")  # (M, 4D)
        h = linear_ln_residual(ff, lp["w2"], lp["b2"],
                               h, lp["ln2_g"], lp["ln2_b"])

    # output head with lane-dense (128-padded) store
    logits = linear_lane_padded(h, params["out_w"], params["out_b"])
    return logits.reshape(B, S, n_outputs)


# -----------------------------------------------------------------------------
if __name__ == "__main__":
    B, S = 2, 8
    n_inputs, n_outputs, n_layers, d_model, n_head = 16, 16, 2, 32, 4

    key = jax.random.PRNGKey(0)
    key, kx, kp = jax.random.split(key, 3)
    params = init_params(kp, n_inputs, n_outputs, n_layers, d_model, n_head)
    x = jax.random.normal(kx, (B, S, n_inputs), dtype=jnp.float32)

    fwd = jax.jit(functools.partial(decoder_only_forward,
                                    d_model=d_model, n_head=n_head,
                                    n_outputs=n_outputs))
    logits = fwd(x, params)
    jax.block_until_ready(logits)
    assert logits.shape == (B, S, n_outputs) and logits.dtype == jnp.float32
    assert bool(jnp.all(jnp.isfinite(logits)))
    print("KERNEL_OK")
</pallas_src>

<mosaic_0001>
module attributes {stable_mosaic.version = 11 : i64} {
  func.func @_linear_kernel(%arg0: i32, %arg1: i32, %arg2: i32, %arg3: memref<16x32xf32, #tpu.memory_space<vmem>>, %arg4: memref<32x96xf32, #tpu.memory_space<vmem>>, %arg5: memref<1x96xf32, #tpu.memory_space<vmem>>, %arg6: memref<16x96xf32, #tpu.memory_space<vmem>>, %arg7: memref<16x96xf32, #tpu.memory_space<vmem>>) attributes {dimension_semantics = [#tpu.dimension_semantics<parallel>, #tpu.dimension_semantics<parallel>, #tpu.dimension_semantics<arbitrary>], iteration_bounds = array<i64: 1, 1, 1>, scalar_prefetch = 0 : i64, scratch_operands = 1 : i64, tpu.core_type = #tpu.core_type<tc>, window_params = [{transform_indices = @transform_0, window_bounds = array<i64: 16, 32>}, {transform_indices = @transform_1, window_bounds = array<i64: 32, 96>}, {transform_indices = @transform_2, window_bounds = array<i64: 1, 96>}, {transform_indices = @transform_3, window_bounds = array<i64: 16, 96>}]} {
    %c0_i32 = arith.constant 0 : i32
    %0 = arith.cmpi eq, %arg2, %c0_i32 : i32
    %1 = arith.extui %0 : i1 to i32
    %c0_i32_0 = arith.constant 0 : i32
    %2 = arith.cmpi ne, %1, %c0_i32_0 : i32
    scf.if %2 {
      %cst_10 = arith.constant 0.000000e+00 : f32
      %12 = vector.broadcast %cst_10 : f32 to vector<16x96xf32>
      %c0_11 = arith.constant 0 : index
      %c0_12 = arith.constant 0 : index
      %13 = vector.load %arg7[%c0_11, %c0_12] : memref<16x96xf32, #tpu.memory_space<vmem>>, vector<16x96xf32>
      tpu.vector_store %arg7[%c0_11, %c0_12], %12 {strides = array<i32>} : memref<16x96xf32, #tpu.memory_space<vmem>>, vector<16x96xf32>,
    } else {
    }
    %c0 = arith.constant 0 : index
    %c0_1 = arith.constant 0 : index
    %3 = vector.load %arg7[%c0, %c0_1] : memref<16x96xf32, #tpu.memory_space<vmem>>, vector<16x96xf32>
    %c0_2 = arith.constant 0 : index
    %c0_3 = arith.constant 0 : index
    %4 = vector.load %arg3[%c0_2, %c0_3] : memref<16x32xf32, #tpu.memory_space<vmem>>, vector<16x32xf32>
    %c0_4 = arith.constant 0 : index
    %c0_5 = arith.constant 0 : index
    %5 = vector.load %arg4[%c0_4, %c0_5] : memref<32x96xf32, #tpu.memory_space<vmem>>, vector<32x96xf32>
    %cst = arith.constant dense<0.000000e+00> : vector<16x96xf32>
    %6 = tpu.matmul %4, %5, %cst {dimension_numbers = #tpu.dot_dimension_numbers<[1], [0], [0], [1], [0, 0, 1, 1], [], []>} : vector<16x32xf32>, vector<32x96xf32>, vector<16x96xf32> -> vector<16x96xf32>
    %7 = arith.addf %3, %6 : vector<16x96xf32>
    %c0_6 = arith.constant 0 : index
    %c0_7 = arith.constant 0 : index
    %8 = vector.load %arg7[%c0_6, %c0_7] : memref<16x96xf32, #tpu.memory_space<vmem>>, vector<16x96xf32>
    tpu.vector_store %arg7[%c0_6, %c0_7], %7 {strides = array<i32>} : memref<16x96xf32, #tpu.memory_space<vmem>>, vector<16x96xf32>,
    %c0_i32_8 = arith.constant 0 : i32
    %9 = arith.cmpi eq, %arg2, %c0_i32_8 : i32
    %10 = arith.extui %9 : i1 to i32
    %c0_i32_9 = arith.constant 0 : i32
    %11 = arith.cmpi ne, %10, %c0_i32_9 : i32
    scf.if %11 {
      %c0_10 = arith.constant 0 : index
      %c0_11 = arith.constant 0 : index
      %12 = vector.load %arg7[%c0_10, %c0_11] : memref<16x96xf32, #tpu.memory_space<vmem>>, vector<16x96xf32>
      %c0_12 = arith.constant 0 : index
      %c0_13 = arith.constant 0 : index
      %13 = vector.load %arg5[%c0_12, %c0_13] : memref<1x96xf32, #tpu.memory_space<vmem>>, vector<1x96xf32>
      %14 = vector.broadcast %13 : vector<1x96xf32> to vector<16x96xf32>
      %15 = arith.addf %12, %14 : vector<16x96xf32>
      %c0_14 = arith.constant 0 : index
      %c0_15 = arith.constant 0 : index
      %16 = vector.load %arg6[%c0_14, %c0_15] : memref<16x96xf32, #tpu.memory_space<vmem>>, vector<16x96xf32>
      tpu.vector_store %arg6[%c0_14, %c0_15], %15 {strides = array<i32>} : memref<16x96xf32, #tpu.memory_space<vmem>>, vector<16x96xf32>,
    } else {
    }
    return
  }
  func.func @transform_0(%arg0: i32, %arg1: i32, %arg2: i32) -> (i32, i32) {
    %c0_i32 = arith.constant 0 : i32
    return %arg0, %arg2 : i32, i32
  }
  func.func @transform_1(%arg0: i32, %arg1: i32, %arg2: i32) -> (i32, i32) {
    %c0_i32 = arith.constant 0 : i32
    return %arg2, %arg1 : i32, i32
  }
  func.func @transform_2(%arg0: i32, %arg1: i32, %arg2: i32) -> (i32, i32) {
    %c0_i32 = arith.constant 0 : i32
    %c0_i32_0 = arith.constant 0 : i32
    return %c0_i32, %arg1 : i32, i32
  }
  func.func @transform_3(%arg0: i32, %arg1: i32, %arg2: i32) -> (i32, i32) {
    %c0_i32 = arith.constant 0 : i32
    return %arg0, %arg1 : i32, i32
  }
}

module attributes {stable_mosaic.version = 11 : i64} {
  func.func @_mhsa_kernel(%arg0: i32, %arg1: memref<3x1x4x8x8xf32, #tpu.memory_space<vmem>>, %arg2: memref<1x4x8x8xf32, #tpu.memory_space<vmem>>) attributes {dimension_semantics = [#tpu.dimension_semantics<parallel>], iteration_bounds = array<i64: 2>, scalar_prefetch = 0 : i64, scratch_operands = 0 : i64, tpu.core_type = #tpu.core_type<tc>, window_params = [{transform_indices = @transform_0, window_bounds = array<i64: 3, 1, 4, 8, 8>}, {transform_indices = @transform_1, window_bounds = array<i64: 1, 4, 8, 8>}]} {
    %c0 = arith.constant 0 : index
    %c0_0 = arith.constant 0 : index
    %c0_1 = arith.constant 0 : index
    %c0_2 = arith.constant 0 : index
    %c0_3 = arith.constant 0 : index
    %0 = vector.load %arg1[%c0, %c0_0, %c0_1, %c0_2, %c0_3] : memref<3x1x4x8x8xf32, #tpu.memory_space<vmem>>, vector<1x1x4x8x8xf32>
    %1 = vector.shape_cast %0 : vector<1x1x4x8x8xf32> to vector<4x8x8xf32>
    %cst = arith.constant 0.353553385 : f32
    %2 = vector.broadcast %cst : f32 to vector<4x8x8xf32>
    %3 = arith.mulf %1, %2 : vector<4x8x8xf32>
    %c1 = arith.constant 1 : index
    %c0_4 = arith.constant 0 : index
    %c0_5 = arith.constant 0 : index
    %c0_6 = arith.constant 0 : index
    %c0_7 = arith.constant 0 : index
    %4 = vector.load %arg1[%c1, %c0_4, %c0_5, %c0_6, %c0_7] : memref<3x1x4x8x8xf32, #tpu.memory_space<vmem>>, vector<1x1x4x8x8xf32>
    %5 = vector.shape_cast %4 : vector<1x1x4x8x8xf32> to vector<4x8x8xf32>
    %c2 = arith.constant 2 : index
    %c0_8 = arith.constant 0 : index
    %c0_9 = arith.constant 0 : index
    %c0_10 = arith.constant 0 : index
    %c0_11 = arith.constant 0 : index
    %6 = vector.load %arg1[%c2, %c0_8, %c0_9, %c0_10, %c0_11] : memref<3x1x4x8x8xf32, #tpu.memory_space<vmem>>, vector<1x1x4x8x8xf32>
    %7 = vector.shape_cast %6 : vector<1x1x4x8x8xf32> to vector<4x8x8xf32>
    "tpu.trace_start"() <{level = 10 : i32, message = "hqd,hkd->hqk"}> : () -> ()
    %cst_12 = arith.constant dense<0.000000e+00> : vector<4x8x8xf32>
    %8 = tpu.matmul %3, %5, %cst_12 {dimension_numbers = #tpu.dot_dimension_numbers<[2], [2], [1], [1], [0, 0, 0, 1, 1, 1], [0], [0]>} : vector<4x8x8xf32>, vector<4x8x8xf32>, vector<4x8x8xf32> -> vector<4x8x8xf32>
    "tpu.trace_stop"() : () -> ()
    %cst_13 = arith.constant dense<0xFF800000> : vector<4x8xf32>
    %9 = vector.multi_reduction <maximumf>, %8, %cst_13 [2] : vector<4x8x8xf32> to vector<4x8xf32>
    %10 = vector.shape_cast %9 : vector<4x8xf32> to vector<4x8x1xf32>
    %11 = vector.broadcast %10 : vector<4x8x1xf32> to vector<4x8x8xf32>
    %12 = arith.subf %8, %11 : vector<4x8x8xf32>
    %13 = math.exp %12 : vector<4x8x8xf32>
    %cst_14 = arith.constant dense<0.000000e+00> : vector<4x8xf32>
    %14 = vector.multi_reduction <add>, %13, %cst_14 [2] : vector<4x8x8xf32> to vector<4x8xf32>
    %15 = vector.shape_cast %14 : vector<4x8xf32> to vector<4x8x1xf32>
    %16 = vector.broadcast %15 : vector<4x8x1xf32> to vector<4x8x8xf32>
    %17 = arith.divf %13, %16 : vector<4x8x8xf32>
    "tpu.trace_start"() <{level = 10 : i32, message = "hqk,hkd->hqd"}> : () -> ()
    %cst_15 = arith.constant dense<0.000000e+00> : vector<4x8x8xf32>
    %18 = tpu.matmul %17, %7, %cst_15 {dimension_numbers = #tpu.dot_dimension_numbers<[2], [1], [1], [2], [0, 0, 0, 1, 1, 2], [0], [0]>} : vector<4x8x8xf32>, vector<4x8x8xf32>, vector<4x8x8xf32> -> vector<4x8x8xf32>
    "tpu.trace_stop"() : () -> ()
    %c0_16 = arith.constant 0 : index
    %c0_17 = arith.constant 0 : index
    %c0_18 = arith.constant 0 : index
    %c0_19 = arith.constant 0 : index
    %19 = vector.load %arg2[%c0_16, %c0_17, %c0_18, %c0_19] : memref<1x4x8x8xf32, #tpu.memory_space<vmem>>, vector<1x4x8x8xf32>
    %20 = vector.shape_cast %19 : vector<1x4x8x8xf32> to vector<4x8x8xf32>
    %21 = vector.shape_cast %18 : vector<4x8x8xf32> to vector<1x4x8x8xf32>
    tpu.vector_store %arg2[%c0_16, %c0_17, %c0_18, %c0_19], %21 {strides = array<i32>} : memref<1x4x8x8xf32, #tpu.memory_space<vmem>>, vector<1x4x8x8xf32>,
    return
  }
  func.func @transform_0(%arg0: i32) -> (i32, i32, i32, i32, i32) {
    %c0_i32 = arith.constant 0 : i32
    %c0_i32_0 = arith.constant 0 : i32
    %c0_i32_1 = arith.constant 0 : i32
    %c0_i32_2 = arith.constant 0 : i32
    %c0_i32_3 = arith.constant 0 : i32
    return %c0_i32, %arg0, %c0_i32_0, %c0_i32_1, %c0_i32_2 : i32, i32, i32, i32, i32
  }
  func.func @transform_1(%arg0: i32) -> (i32, i32, i32, i32) {
    %c0_i32 = arith.constant 0 : i32
    %c0_i32_0 = arith.constant 0 : i32
    %c0_i32_1 = arith.constant 0 : i32
    %c0_i32_2 = arith.constant 0 : i32
    return %arg0, %c0_i32, %c0_i32_0, %c0_i32_1 : i32, i32, i32, i32
  }
}

module attributes {stable_mosaic.version = 11 : i64} {
  func.func @_linear_kernel(%arg0: i32, %arg1: i32, %arg2: i32, %arg3: memref<16x16xf32, #tpu.memory_space<vmem>>, %arg4: memref<16x32xf32, #tpu.memory_space<vmem>>, %arg5: memref<1x32xf32, #tpu.memory_space<vmem>>, %arg6: memref<16x1xf32, #tpu.memory_space<vmem>>, %arg7: memref<16x32xf32, #tpu.memory_space<vmem>>, %arg8: memref<16x32xf32, #tpu.memory_space<vmem>>) attributes {dimension_semantics = [#tpu.dimension_semantics<parallel>, #tpu.dimension_semantics<parallel>, #tpu.dimension_semantics<arbitrary>], iteration_bounds = array<i64: 1, 1, 1>, scalar_prefetch = 0 : i64, scratch_operands = 1 : i64, tpu.core_type = #tpu.core_type<tc>, window_params = [{transform_indices = @transform_0, window_bounds = array<i64: 16, 16>}, {transform_indices = @transform_1, window_bounds = array<i64: 16, 32>}, {transform_indices = @transform_2, window_bounds = array<i64: 1, 32>}, {transform_indices = @transform_3, window_bounds = array<i64: 16, 1>}, {transform_indices = @transform_4, window_bounds = array<i64: 16, 32>}]} {
    %c32_i32 = arith.constant 32 : i32
    %0 = arith.muli %arg1, %c32_i32 : i32
    %c0_i32 = arith.constant 0 : i32
    %1 = arith.cmpi eq, %arg2, %c0_i32 : i32
    %2 = arith.extui %1 : i1 to i32
    %c0_i32_0 = arith.constant 0 : i32
    %3 = arith.cmpi ne, %2, %c0_i32_0 : i32
    scf.if %3 {
      %cst_10 = arith.constant 0.000000e+00 : f32
      %13 = vector.broadcast %cst_10 : f32 to vector<16x32xf32>
      %c0_11 = arith.constant 0 : index
      %c0_12 = arith.constant 0 : index
      %14 = vector.load %arg8[%c0_11, %c0_12] : memref<16x32xf32, #tpu.memory_space<vmem>>, vector<16x32xf32>
      tpu.vector_store %arg8[%c0_11, %c0_12], %13 {strides = array<i32>} : memref<16x32xf32, #tpu.memory_space<vmem>>, vector<16x32xf32>,
    } else {
    }
    %c0 = arith.constant 0 : index
    %c0_1 = arith.constant 0 : index
    %4 = vector.load %arg8[%c0, %c0_1] : memref<16x32xf32, #tpu.memory_space<vmem>>, vector<16x32xf32>
    %c0_2 = arith.constant 0 : index
    %c0_3 = arith.constant 0 : index
    %5 = vector.load %arg3[%c0_2, %c0_3] : memref<16x16xf32, #tpu.memory_space<vmem>>, vector<16x16xf32>
    %c0_4 = arith.constant 0 : index
    %c0_5 = arith.constant 0 : index
    %6 = vector.load %arg4[%c0_4, %c0_5] : memref<16x32xf32, #tpu.memory_space<vmem>>, vector<16x32xf32>
    %cst = arith.constant dense<0.000000e+00> : vector<16x32xf32>
    %7 = tpu.matmul %5, %6, %cst {dimension_numbers = #tpu.dot_dimension_numbers<[1], [0], [0], [1], [0, 0, 1, 1], [], []>} : vector<16x16xf32>, vector<16x32xf32>, vector<16x32xf32> -> vector<16x32xf32>
    %8 = arith.addf %4, %7 : vector<16x32xf32>
    %c0_6 = arith.constant 0 : index
    %c0_7 = arith.constant 0 : index
    %9 = vector.load %arg8[%c0_6, %c0_7] : memref<16x32xf32, #tpu.memory_space<vmem>>, vector<16x32xf32>
    tpu.vector_store %arg8[%c0_6, %c0_7], %8 {strides = array<i32>} : memref<16x32xf32, #tpu.memory_space<vmem>>, vector<16x32xf32>,
    %c0_i32_8 = arith.constant 0 : i32
    %10 = arith.cmpi eq, %arg2, %c0_i32_8 : i32
    %11 = arith.extui %10 : i1 to i32
    %c0_i32_9 = arith.constant 0 : i32
    %12 = arith.cmpi ne, %11, %c0_i32_9 : i32
    scf.if %12 {
      %c0_10 = arith.constant 0 : index
      %c0_11 = arith.constant 0 : index
      %13 = vector.load %arg8[%c0_10, %c0_11] : memref<16x32xf32, #tpu.memory_space<vmem>>, vector<16x32xf32>
      %c0_12 = arith.constant 0 : index
      %c0_13 = arith.constant 0 : index
      %14 = vector.load %arg5[%c0_12, %c0_13] : memref<1x32xf32, #tpu.memory_space<vmem>>, vector<1x32xf32>
      %15 = vector.broadcast %14 : vector<1x32xf32> to vector<16x32xf32>
      %16 = arith.addf %13, %15 : vector<16x32xf32>
      %17 = tpu.iota {dimensions = array<i32: 1>} : vector<16x32xi32>
      %18 = vector.broadcast %0 : i32 to vector<16x32xi32>
      %19 = arith.addi %17, %18 : vector<16x32xi32>
      %c0_i32_14 = arith.constant 0 : i32
      %20 = vector.broadcast %c0_i32_14 : i32 to vector<16x32xi32>
      %21 = arith.cmpi eq, %19, %20 : vector<16x32xi32>
      %c0_15 = arith.constant 0 : index
      %c0_16 = arith.constant 0 : index
      %22 = vector.load %arg6[%c0_15, %c0_16] : memref<16x1xf32, #tpu.memory_space<vmem>>, vector<16x1xf32>
      %cst_17 = arith.constant 0.000000e+00 : f32
      %23 = vector.shape_cast %22 : vector<16x1xf32> to vector<16x1xf32>
      %24 = vector.broadcast %23 : vector<16x1xf32> to vector<16x32xf32>
      %25 = vector.broadcast %cst_17 : f32 to vector<16x32xf32>
      %26 = arith.select %21, %24, %25 : vector<16x32xi1>, vector<16x32xf32>
      %27 = arith.addf %16, %26 : vector<16x32xf32>
      %c0_18 = arith.constant 0 : index
      %c0_19 = arith.constant 0 : index
      %28 = vector.load %arg7[%c0_18, %c0_19] : memref<16x32xf32, #tpu.memory_space<vmem>>, vector<16x32xf32>
      tpu.vector_store %arg7[%c0_18, %c0_19], %27 {strides = array<i32>} : memref<16x32xf32, #tpu.memory_space<vmem>>, vector<16x32xf32>,
    } else {
    }
    return
  }
  func.func @transform_0(%arg0: i32, %arg1: i32, %arg2: i32) -> (i32, i32) {
    %c0_i32 = arith.constant 0 : i32
    return %arg0, %arg2 : i32, i32
  }
  func.func @transform_1(%arg0: i32, %arg1: i32, %arg2: i32) -> (i32, i32) {
    %c0_i32 = arith.constant 0 : i32
    return %arg2, %arg1 : i32, i32
  }
  func.func @transform_2(%arg0: i32, %arg1: i32, %arg2: i32) -> (i32, i32) {
    %c0_i32 = arith.constant 0 : i32
    %c0_i32_0 = arith.constant 0 : i32
    return %c0_i32, %arg1 : i32, i32
  }
  func.func @transform_3(%arg0: i32, %arg1: i32, %arg2: i32) -> (i32, i32) {
    %c0_i32 = arith.constant 0 : i32
    %c0_i32_0 = arith.constant 0 : i32
    return %arg0, %c0_i32 : i32, i32
  }
  func.func @transform_4(%arg0: i32, %arg1: i32, %arg2: i32) -> (i32, i32) {
    %c0_i32 = arith.constant 0 : i32
    return %arg0, %arg1 : i32, i32
  }
}

module attributes {stable_mosaic.version = 11 : i64} {
  func.func @_linear_ln_res_kernel(%arg0: i32, %arg1: i32, %arg2: memref<16x32xf32, #tpu.memory_space<vmem>>, %arg3: memref<32x32xf32, #tpu.memory_space<vmem>>, %arg4: memref<1x32xf32, #tpu.memory_space<vmem>>, %arg5: memref<16x32xf32, #tpu.memory_space<vmem>>, %arg6: memref<1x32xf32, #tpu.memory_space<vmem>>, %arg7: memref<1x32xf32, #tpu.memory_space<vmem>>, %arg8: memref<16x32xf32, #tpu.memory_space<vmem>>, %arg9: memref<16x32xf32, #tpu.memory_space<vmem>>) attributes {dimension_semantics = [#tpu.dimension_semantics<parallel>, #tpu.dimension_semantics<arbitrary>], iteration_bounds = array<i64: 1, 1>, scalar_prefetch = 0 : i64, scratch_operands = 1 : i64, tpu.core_type = #tpu.core_type<tc>, window_params = [{transform_indices = @transform_0, window_bounds = array<i64: 16, 32>}, {transform_indices = @transform_1, window_bounds = array<i64: 32, 32>}, {pipeline_mode = #tpu.pipeline_mode<synchronous>, transform_indices = @transform_2, window_bounds = array<i64: 1, 32>}, {transform_indices = @transform_3, window_bounds = array<i64: 16, 32>}, {pipeline_mode = #tpu.pipeline_mode<synchronous>, transform_indices = @transform_4, window_bounds = array<i64: 1, 32>}, {pipeline_mode = #tpu.pipeline_mode<synchronous>, transform_indices = @transform_5, window_bounds = array<i64: 1, 32>}, {transform_indices = @transform_6, window_bounds = array<i64: 16, 32>}]} {
    %c0_i32 = arith.constant 0 : i32
    %0 = arith.cmpi eq, %arg1, %c0_i32 : i32
    %1 = arith.extui %0 : i1 to i32
    %c0_i32_0 = arith.constant 0 : i32
    %2 = arith.cmpi ne, %1, %c0_i32_0 : i32
    scf.if %2 {
      %cst_10 = arith.constant 0.000000e+00 : f32
      %12 = vector.broadcast %cst_10 : f32 to vector<16x32xf32>
      %c0_11 = arith.constant 0 : index
      %c0_12 = arith.constant 0 : index
      %13 = vector.load %arg9[%c0_11, %c0_12] : memref<16x32xf32, #tpu.memory_space<vmem>>, vector<16x32xf32>
      tpu.vector_store %arg9[%c0_11, %c0_12], %12 {strides = array<i32>} : memref<16x32xf32, #tpu.memory_space<vmem>>, vector<16x32xf32>,
    } else {
    }
    %c0 = arith.constant 0 : index
    %c0_1 = arith.constant 0 : index
    %3 = vector.load %arg9[%c0, %c0_1] : memref<16x32xf32, #tpu.memory_space<vmem>>, vector<16x32xf32>
    %c0_2 = arith.constant 0 : index
    %c0_3 = arith.constant 0 : index
    %4 = vector.load %arg2[%c0_2, %c0_3] : memref<16x32xf32, #tpu.memory_space<vmem>>, vector<16x32xf32>
    %c0_4 = arith.constant 0 : index
    %c0_5 = arith.constant 0 : index
    %5 = vector.load %arg3[%c0_4, %c0_5] : memref<32x32xf32, #tpu.memory_space<vmem>>, vector<32x32xf32>
    %cst = arith.constant dense<0.000000e+00> : vector<16x32xf32>
    %6 = tpu.matmul %4, %5, %cst {dimension_numbers = #tpu.dot_dimension_numbers<[1], [0], [0], [1], [0, 0, 1, 1], [], []>} : vector<16x32xf32>, vector<32x32xf32>, vector<16x32xf32> -> vector<16x32xf32>
    %7 = arith.addf %3, %6 : vector<16x32xf32>
    %c0_6 = arith.constant 0 : index
    %c0_7 = arith.constant 0 : index
    %8 = vector.load %arg9[%c0_6, %c0_7] : memref<16x32xf32, #tpu.memory_space<vmem>>, vector<16x32xf32>
    tpu.vector_store %arg9[%c0_6, %c0_7], %7 {strides = array<i32>} : memref<16x32xf32, #tpu.memory_space<vmem>>, vector<16x32xf32>,
    %c0_i32_8 = arith.constant 0 : i32
    %9 = arith.cmpi eq, %arg1, %c0_i32_8 : i32
    %10 = arith.extui %9 : i1 to i32
    %c0_i32_9 = arith.constant 0 : i32
    %11 = arith.cmpi ne, %10, %c0_i32_9 : i32
    scf.if %11 {
      %c0_10 = arith.constant 0 : index
      %c0_11 = arith.constant 0 : index
      %12 = vector.load %arg9[%c0_10, %c0_11] : memref<16x32xf32, #tpu.memory_space<vmem>>, vector<16x32xf32>
      %c0_12 = arith.constant 0 : index
      %c0_13 = arith.constant 0 : index
      %13 = vector.load %arg4[%c0_12, %c0_13] : memref<1x32xf32, #tpu.memory_space<vmem>>, vector<1x32xf32>
      %14 = vector.broadcast %13 : vector<1x32xf32> to vector<16x32xf32>
      %15 = arith.addf %12, %14 : vector<16x32xf32>
      %cst_14 = arith.constant dense<0.000000e+00> : vector<16xf32>
      %16 = vector.multi_reduction <add>, %15, %cst_14 [1] : vector<16x32xf32> to vector<16xf32>
      %17 = vector.shape_cast %16 : vector<16xf32> to vector<16x1xf32>
      %cst_15 = arith.constant 3.200000e+01 : f32
      %18 = vector.broadcast %cst_15 : f32 to vector<16x1xf32>
      %19 = arith.divf %17, %18 : vector<16x1xf32>
      %20 = vector.broadcast %19 : vector<16x1xf32> to vector<16x32xf32>
      %21 = arith.subf %15, %20 : vector<16x32xf32>
      %22 = arith.mulf %21, %21 : vector<16x32xf32>
      %cst_16 = arith.constant dense<0.000000e+00> : vector<16xf32>
      %23 = vector.multi_reduction <add>, %22, %cst_16 [1] : vector<16x32xf32> to vector<16xf32>
      %24 = vector.shape_cast %23 : vector<16xf32> to vector<16x1xf32>
      %cst_17 = arith.constant 3.200000e+01 : f32
      %25 = vector.broadcast %cst_17 : f32 to vector<16x1xf32>
      %26 = arith.divf %24, %25 : vector<16x1xf32>
      %cst_18 = arith.constant 9.99999974E-6 : f32
      %27 = vector.broadcast %cst_18 : f32 to vector<16x1xf32>
      %28 = arith.addf %26, %27 : vector<16x1xf32>
      %29 = math.rsqrt %28 : vector<16x1xf32>
      %30 = vector.broadcast %29 : vector<16x1xf32> to vector<16x32xf32>
      %31 = arith.mulf %21, %30 : vector<16x32xf32>
      %c0_19 = arith.constant 0 : index
      %c0_20 = arith.constant 0 : index
      %32 = vector.load %arg5[%c0_19, %c0_20] : memref<16x32xf32, #tpu.memory_space<vmem>>, vector<16x32xf32>
      %c0_21 = arith.constant 0 : index
      %c0_22 = arith.constant 0 : index
      %33 = vector.load %arg6[%c0_21, %c0_22] : memref<1x32xf32, #tpu.memory_space<vmem>>, vector<1x32xf32>
      %34 = vector.broadcast %33 : vector<1x32xf32> to vector<16x32xf32>
      %35 = arith.mulf %31, %34 : vector<16x32xf32>
      %36 = arith.addf %32, %35 : vector<16x32xf32>
      %c0_23 = arith.constant 0 : index
      %c0_24 = arith.constant 0 : index
      %37 = vector.load %arg7[%c0_23, %c0_24] : memref<1x32xf32, #tpu.memory_space<vmem>>, vector<1x32xf32>
      %38 = vector.broadcast %37 : vector<1x32xf32> to vector<16x32xf32>
      %39 = arith.addf %36, %38 : vector<16x32xf32>
      %c0_25 = arith.constant 0 : index
      %c0_26 = arith.constant 0 : index
      %40 = vector.load %arg8[%c0_25, %c0_26] : memref<16x32xf32, #tpu.memory_space<vmem>>, vector<16x32xf32>
      tpu.vector_store %arg8[%c0_25, %c0_26], %39 {strides = array<i32>} : memref<16x32xf32, #tpu.memory_space<vmem>>, vector<16x32xf32>,
    } else {
    }
    return
  }
  func.func @transform_0(%arg0: i32, %arg1: i32) -> (i32, i32) {
    %c0_i32 = arith.constant 0 : i32
    return %arg0, %arg1 : i32, i32
  }
  func.func @transform_1(%arg0: i32, %arg1: i32) -> (i32, i32) {
    %c0_i32 = arith.constant 0 : i32
    %c0_i32_0 = arith.constant 0 : i32
    return %arg1, %c0_i32 : i32, i32
  }
  func.func @transform_2(%arg0: i32, %arg1: i32) -> (i32, i32) {
    %c0_i32 = arith.constant 0 : i32
    %c0_i32_0 = arith.constant 0 : i32
    %c0_i32_1 = arith.constant 0 : i32
    return %c0_i32, %c0_i32_0 : i32, i32
  }
  func.func @transform_3(%arg0: i32, %arg1: i32) -> (i32, i32) {
    %c0_i32 = arith.constant 0 : i32
    %c0_i32_0 = arith.constant 0 : i32
    return %arg0, %c0_i32 : i32, i32
  }
  func.func @transform_4(%arg0: i32, %arg1: i32) -> (i32, i32) {
    %c0_i32 = arith.constant 0 : i32
    %c0_i32_0 = arith.constant 0 : i32
    %c0_i32_1 = arith.constant 0 : i32
    return %c0_i32, %c0_i32_0 : i32, i32
  }
  func.func @transform_5(%arg0: i32, %arg1: i32) -> (i32, i32) {
    %c0_i32 = arith.constant 0 : i32
    %c0_i32_0 = arith.constant 0 : i32
    %c0_i32_1 = arith.constant 0 : i32
    return %c0_i32, %c0_i32_0 : i32, i32
  }
  func.func @transform_6(%arg0: i32, %arg1: i32) -> (i32, i32) {
    %c0_i32 = arith.constant 0 : i32
    %c0_i32_0 = arith.constant 0 : i32
    return %arg0, %c0_i32 : i32, i32
  }
}

module attributes {stable_mosaic.version = 11 : i64} {
  func.func @_linear_kernel(%arg0: i32, %arg1: i32, %arg2: i32, %arg3: memref<16x32xf32, #tpu.memory_space<vmem>>, %arg4: memref<32x128xf32, #tpu.memory_space<vmem>>, %arg5: memref<1x128xf32, #tpu.memory_space<vmem>>, %arg6: memref<16x128xf32, #tpu.memory_space<vmem>>, %arg7: memref<16x128xf32, #tpu.memory_space<vmem>>) attributes {dimension_semantics = [#tpu.dimension_semantics<parallel>, #tpu.dimension_semantics<parallel>, #tpu.dimension_semantics<arbitrary>], iteration_bounds = array<i64: 1, 1, 1>, scalar_prefetch = 0 : i64, scratch_operands = 1 : i64, tpu.core_type = #tpu.core_type<tc>, window_params = [{transform_indices = @transform_0, window_bounds = array<i64: 16, 32>}, {transform_indices = @transform_1, window_bounds = array<i64: 32, 128>}, {transform_indices = @transform_2, window_bounds = array<i64: 1, 128>}, {transform_indices = @transform_3, window_bounds = array<i64: 16, 128>}]} {
    %c0_i32 = arith.constant 0 : i32
    %0 = arith.cmpi eq, %arg2, %c0_i32 : i32
    %1 = arith.extui %0 : i1 to i32
    %c0_i32_0 = arith.constant 0 : i32
    %2 = arith.cmpi ne, %1, %c0_i32_0 : i32
    scf.if %2 {
      %cst_10 = arith.constant 0.000000e+00 : f32
      %12 = vector.broadcast %cst_10 : f32 to vector<16x128xf32>
      %c0_11 = arith.constant 0 : index
      %c0_12 = arith.constant 0 : index
      %13 = vector.load %arg7[%c0_11, %c0_12] : memref<16x128xf32, #tpu.memory_space<vmem>>, vector<16x128xf32>
      tpu.vector_store %arg7[%c0_11, %c0_12], %12 {strides = array<i32>} : memref<16x128xf32, #tpu.memory_space<vmem>>, vector<16x128xf32>,
    } else {
    }
    %c0 = arith.constant 0 : index
    %c0_1 = arith.constant 0 : index
    %3 = vector.load %arg7[%c0, %c0_1] : memref<16x128xf32, #tpu.memory_space<vmem>>, vector<16x128xf32>
    %c0_2 = arith.constant 0 : index
    %c0_3 = arith.constant 0 : index
    %4 = vector.load %arg3[%c0_2, %c0_3] : memref<16x32xf32, #tpu.memory_space<vmem>>, vector<16x32xf32>
    %c0_4 = arith.constant 0 : index
    %c0_5 = arith.constant 0 : index
    %5 = vector.load %arg4[%c0_4, %c0_5] : memref<32x128xf32, #tpu.memory_space<vmem>>, vector<32x128xf32>
    %cst = arith.constant dense<0.000000e+00> : vector<16x128xf32>
    %6 = tpu.matmul %4, %5, %cst {dimension_numbers = #tpu.dot_dimension_numbers<[1], [0], [0], [1], [0, 0, 1, 1], [], []>} : vector<16x32xf32>, vector<32x128xf32>, vector<16x128xf32> -> vector<16x128xf32>
    %7 = arith.addf %3, %6 : vector<16x128xf32>
    %c0_6 = arith.constant 0 : index
    %c0_7 = arith.constant 0 : index
    %8 = vector.load %arg7[%c0_6, %c0_7] : memref<16x128xf32, #tpu.memory_space<vmem>>, vector<16x128xf32>
    tpu.vector_store %arg7[%c0_6, %c0_7], %7 {strides = array<i32>} : memref<16x128xf32, #tpu.memory_space<vmem>>, vector<16x128xf32>,
    %c0_i32_8 = arith.constant 0 : i32
    %9 = arith.cmpi eq, %arg2, %c0_i32_8 : i32
    %10 = arith.extui %9 : i1 to i32
    %c0_i32_9 = arith.constant 0 : i32
    %11 = arith.cmpi ne, %10, %c0_i32_9 : i32
    scf.if %11 {
      %c0_10 = arith.constant 0 : index
      %c0_11 = arith.constant 0 : index
      %12 = vector.load %arg7[%c0_10, %c0_11] : memref<16x128xf32, #tpu.memory_space<vmem>>, vector<16x128xf32>
      %c0_12 = arith.constant 0 : index
      %c0_13 = arith.constant 0 : index
      %13 = vector.load %arg5[%c0_12, %c0_13] : memref<1x128xf32, #tpu.memory_space<vmem>>, vector<1x128xf32>
      %14 = vector.broadcast %13 : vector<1x128xf32> to vector<16x128xf32>
      %15 = arith.addf %12, %14 : vector<16x128xf32>
      %cst_14 = arith.constant 5.000000e-01 : f32
      %16 = vector.broadcast %cst_14 : f32 to vector<16x128xf32>
      %17 = arith.mulf %16, %15 : vector<16x128xf32>
      %cst_15 = arith.constant 0.707106769 : f32
      %18 = vector.broadcast %cst_15 : f32 to vector<16x128xf32>
      %19 = arith.mulf %15, %18 : vector<16x128xf32>
      %cst_16 = arith.constant -4.000000e+00 : f32
      %cst_17 = arith.constant 4.000000e+00 : f32
      %20 = vector.broadcast %cst_16 : f32 to vector<16x128xf32>
      %21 = arith.maximumf %20, %19 : vector<16x128xf32>
      %22 = vector.broadcast %cst_17 : f32 to vector<16x128xf32>
      %23 = arith.minimumf %22, %21 : vector<16x128xf32>
      %24 = arith.mulf %23, %23 : vector<16x128xf32>
      %cst_18 = arith.constant -2.72614237E-10 : f32
      %25 = vector.broadcast %cst_18 : f32 to vector<16x128xf32>
      %26 = arith.mulf %25, %24 : vector<16x128xf32>
      %cst_19 = arith.constant 2.77068146E-8 : f32
      %27 = vector.broadcast %cst_19 : f32 to vector<16x128xf32>
      %28 = arith.addf %26, %27 : vector<16x128xf32>
      %29 = arith.mulf %28, %24 : vector<16x128xf32>
      %cst_20 = arith.constant -2.10102394E-6 : f32
      %30 = vector.broadcast %cst_20 : f32 to vector<16x128xf32>
      %31 = arith.addf %29, %30 : vector<16x128xf32>
      %32 = arith.mulf %31, %24 : vector<16x128xf32>
      %cst_21 = arith.constant -5.69250624E-5 : f32
      %33 = vector.broadcast %cst_21 : f32 to vector<16x128xf32>
      %34 = arith.addf %32, %33 : vector<16x128xf32>
      %35 = arith.mulf %34, %24 : vector<16x128xf32>
      %cst_22 = arith.constant -7.34990637E-4 : f32
      %36 = vector.broadcast %cst_22 : f32 to vector<16x128xf32>
      %37 = arith.addf %35, %36 : vector<16x128xf32>
      %38 = arith.mulf %37, %24 : vector<16x128xf32>
      %cst_23 = arith.constant -2.954600e-03 : f32
      %39 = vector.broadcast %cst_23 : f32 to vector<16x128xf32>
      %40 = arith.addf %38, %39 : vector<16x128xf32>
      %41 = arith.mulf %40, %24 : vector<16x128xf32>
      %cst_24 = arith.constant -0.0160960332 : f32
      %42 = vector.broadcast %cst_24 : f32 to vector<16x128xf32>
      %43 = arith.addf %41, %42 : vector<16x128xf32>
      %cst_25 = arith.constant -1.45660715E-5 : f32
      %44 = vector.broadcast %cst_25 : f32 to vector<16x128xf32>
      %45 = arith.mulf %44, %24 : vector<16x128xf32>
      %cst_26 = arith.constant -2.13374049E-4 : f32
      %46 = vector.broadcast %cst_26 : f32 to vector<16x128xf32>
      %47 = arith.addf %45, %46 : vector<16x128xf32>
      %48 = arith.mulf %47, %24 : vector<16x128xf32>
      %cst_27 = arith.constant -0.00168282702 : f32
      %49 = vector.broadcast %cst_27 : f32 to vector<16x128xf32>
      %50 = arith.addf %48, %49 : vector<16x128xf32>
      %51 = arith.mulf %50, %24 : vector<16x128xf32>
      %cst_28 = arith.constant -0.00737332925 : f32
      %52 = vector.broadcast %cst_28 : f32 to vector<16x128xf32>
      %53 = arith.addf %51, %52 : vector<16x128xf32>
      %54 = arith.mulf %53, %24 : vector<16x128xf32>
      %cst_29 = arith.constant -0.0142647391 : f32
      %55 = vector.broadcast %cst_29 : f32 to vector<16x128xf32>
      %56 = arith.addf %54, %55 : vector<16x128xf32>
      %57 = arith.mulf %23, %43 : vector<16x128xf32>
      %58 = arith.divf %57, %56 : vector<16x128xf32>
      %cst_30 = arith.constant 1.000000e+00 : f32
      %59 = vector.broadcast %cst_30 : f32 to vector<16x128xf32>
      %60 = arith.addf %59, %58 : vector<16x128xf32>
      %61 = arith.mulf %17, %60 : vector<16x128xf32>
      %c0_31 = arith.constant 0 : index
      %c0_32 = arith.constant 0 : index
      %62 = vector.load %arg6[%c0_31, %c0_32] : memref<16x128xf32, #tpu.memory_space<vmem>>, vector<16x128xf32>
      tpu.vector_store %arg6[%c0_31, %c0_32], %61 {strides = array<i32>} : memref<16x128xf32, #tpu.memory_space<vmem>>, vector<16x128xf32>,
    } else {
    }
    return
  }
  func.func @transform_0(%arg0: i32, %arg1: i32, %arg2: i32) -> (i32, i32) {
    %c0_i32 = arith.constant 0 : i32
    return %arg0, %arg2 : i32, i32
  }
  func.func @transform_1(%arg0: i32, %arg1: i32, %arg2: i32) -> (i32, i32) {
    %c0_i32 = arith.constant 0 : i32
    return %arg2, %arg1 : i32, i32
  }
  func.func @transform_2(%arg0: i32, %arg1: i32, %arg2: i32) -> (i32, i32) {
    %c0_i32 = arith.constant 0 : i32
    %c0_i32_0 = arith.constant 0 : i32
    return %c0_i32, %arg1 : i32, i32
  }
  func.func @transform_3(%arg0: i32, %arg1: i32, %arg2: i32) -> (i32, i32) {
    %c0_i32 = arith.constant 0 : i32
    return %arg0, %arg1 : i32, i32
  }
}

module attributes {stable_mosaic.version = 11 : i64} {
  func.func @_linear_ln_res_kernel(%arg0: i32, %arg1: i32, %arg2: memref<16x128xf32, #tpu.memory_space<vmem>>, %arg3: memref<128x32xf32, #tpu.memory_space<vmem>>, %arg4: memref<1x32xf32, #tpu.memory_space<vmem>>, %arg5: memref<16x32xf32, #tpu.memory_space<vmem>>, %arg6: memref<1x32xf32, #tpu.memory_space<vmem>>, %arg7: memref<1x32xf32, #tpu.memory_space<vmem>>, %arg8: memref<16x32xf32, #tpu.memory_space<vmem>>, %arg9: memref<16x32xf32, #tpu.memory_space<vmem>>) attributes {dimension_semantics = [#tpu.dimension_semantics<parallel>, #tpu.dimension_semantics<arbitrary>], iteration_bounds = array<i64: 1, 1>, scalar_prefetch = 0 : i64, scratch_operands = 1 : i64, tpu.core_type = #tpu.core_type<tc>, window_params = [{transform_indices = @transform_0, window_bounds = array<i64: 16, 128>}, {transform_indices = @transform_1, window_bounds = array<i64: 128, 32>}, {pipeline_mode = #tpu.pipeline_mode<synchronous>, transform_indices = @transform_2, window_bounds = array<i64: 1, 32>}, {transform_indices = @transform_3, window_bounds = array<i64: 16, 32>}, {pipeline_mode = #tpu.pipeline_mode<synchronous>, transform_indices = @transform_4, window_bounds = array<i64: 1, 32>}, {pipeline_mode = #tpu.pipeline_mode<synchronous>, transform_indices = @transform_5, window_bounds = array<i64: 1, 32>}, {transform_indices = @transform_6, window_bounds = array<i64: 16, 32>}]} {
    %c0_i32 = arith.constant 0 : i32
    %0 = arith.cmpi eq, %arg1, %c0_i32 : i32
    %1 = arith.extui %0 : i1 to i32
    %c0_i32_0 = arith.constant 0 : i32
    %2 = arith.cmpi ne, %1, %c0_i32_0 : i32
    scf.if %2 {
      %cst_10 = arith.constant 0.000000e+00 : f32
      %12 = vector.broadcast %cst_10 : f32 to vector<16x32xf32>
      %c0_11 = arith.constant 0 : index
      %c0_12 = arith.constant 0 : index
      %13 = vector.load %arg9[%c0_11, %c0_12] : memref<16x32xf32, #tpu.memory_space<vmem>>, vector<16x32xf32>
      tpu.vector_store %arg9[%c0_11, %c0_12], %12 {strides = array<i32>} : memref<16x32xf32, #tpu.memory_space<vmem>>, vector<16x32xf32>,
    } else {
    }
    %c0 = arith.constant 0 : index
    %c0_1 = arith.constant 0 : index
    %3 = vector.load %arg9[%c0, %c0_1] : memref<16x32xf32, #tpu.memory_space<vmem>>, vector<16x32xf32>
    %c0_2 = arith.constant 0 : index
    %c0_3 = arith.constant 0 : index
    %4 = vector.load %arg2[%c0_2, %c0_3] : memref<16x128xf32, #tpu.memory_space<vmem>>, vector<16x128xf32>
    %c0_4 = arith.constant 0 : index
    %c0_5 = arith.constant 0 : index
    %5 = vector.load %arg3[%c0_4, %c0_5] : memref<128x32xf32, #tpu.memory_space<vmem>>, vector<128x32xf32>
    %cst = arith.constant dense<0.000000e+00> : vector<16x32xf32>
    %6 = tpu.matmul %4, %5, %cst {dimension_numbers = #tpu.dot_dimension_numbers<[1], [0], [0], [1], [0, 0, 1, 1], [], []>} : vector<16x128xf32>, vector<128x32xf32>, vector<16x32xf32> -> vector<16x32xf32>
    %7 = arith.addf %3, %6 : vector<16x32xf32>
    %c0_6 = arith.constant 0 : index
    %c0_7 = arith.constant 0 : index
    %8 = vector.load %arg9[%c0_6, %c0_7] : memref<16x32xf32, #tpu.memory_space<vmem>>, vector<16x32xf32>
    tpu.vector_store %arg9[%c0_6, %c0_7], %7 {strides = array<i32>} : memref<16x32xf32, #tpu.memory_space<vmem>>, vector<16x32xf32>,
    %c0_i32_8 = arith.constant 0 : i32
    %9 = arith.cmpi eq, %arg1, %c0_i32_8 : i32
    %10 = arith.extui %9 : i1 to i32
    %c0_i32_9 = arith.constant 0 : i32
    %11 = arith.cmpi ne, %10, %c0_i32_9 : i32
    scf.if %11 {
      %c0_10 = arith.constant 0 : index
      %c0_11 = arith.constant 0 : index
      %12 = vector.load %arg9[%c0_10, %c0_11] : memref<16x32xf32, #tpu.memory_space<vmem>>, vector<16x32xf32>
      %c0_12 = arith.constant 0 : index
      %c0_13 = arith.constant 0 : index
      %13 = vector.load %arg4[%c0_12, %c0_13] : memref<1x32xf32, #tpu.memory_space<vmem>>, vector<1x32xf32>
      %14 = vector.broadcast %13 : vector<1x32xf32> to vector<16x32xf32>
      %15 = arith.addf %12, %14 : vector<16x32xf32>
      %cst_14 = arith.constant dense<0.000000e+00> : vector<16xf32>
      %16 = vector.multi_reduction <add>, %15, %cst_14 [1] : vector<16x32xf32> to vector<16xf32>
      %17 = vector.shape_cast %16 : vector<16xf32> to vector<16x1xf32>
      %cst_15 = arith.constant 3.200000e+01 : f32
      %18 = vector.broadcast %cst_15 : f32 to vector<16x1xf32>
      %19 = arith.divf %17, %18 : vector<16x1xf32>
      %20 = vector.broadcast %19 : vector<16x1xf32> to vector<16x32xf32>
      %21 = arith.subf %15, %20 : vector<16x32xf32>
      %22 = arith.mulf %21, %21 : vector<16x32xf32>
      %cst_16 = arith.constant dense<0.000000e+00> : vector<16xf32>
      %23 = vector.multi_reduction <add>, %22, %cst_16 [1] : vector<16x32xf32> to vector<16xf32>
      %24 = vector.shape_cast %23 : vector<16xf32> to vector<16x1xf32>
      %cst_17 = arith.constant 3.200000e+01 : f32
      %25 = vector.broadcast %cst_17 : f32 to vector<16x1xf32>
      %26 = arith.divf %24, %25 : vector<16x1xf32>
      %cst_18 = arith.constant 9.99999974E-6 : f32
      %27 = vector.broadcast %cst_18 : f32 to vector<16x1xf32>
      %28 = arith.addf %26, %27 : vector<16x1xf32>
      %29 = math.rsqrt %28 : vector<16x1xf32>
      %30 = vector.broadcast %29 : vector<16x1xf32> to vector<16x32xf32>
      %31 = arith.mulf %21, %30 : vector<16x32xf32>
      %c0_19 = arith.constant 0 : index
      %c0_20 = arith.constant 0 : index
      %32 = vector.load %arg5[%c0_19, %c0_20] : memref<16x32xf32, #tpu.memory_space<vmem>>, vector<16x32xf32>
      %c0_21 = arith.constant 0 : index
      %c0_22 = arith.constant 0 : index
      %33 = vector.load %arg6[%c0_21, %c0_22] : memref<1x32xf32, #tpu.memory_space<vmem>>, vector<1x32xf32>
      %34 = vector.broadcast %33 : vector<1x32xf32> to vector<16x32xf32>
      %35 = arith.mulf %31, %34 : vector<16x32xf32>
      %36 = arith.addf %32, %35 : vector<16x32xf32>
      %c0_23 = arith.constant 0 : index
      %c0_24 = arith.constant 0 : index
      %37 = vector.load %arg7[%c0_23, %c0_24] : memref<1x32xf32, #tpu.memory_space<vmem>>, vector<1x32xf32>
      %38 = vector.broadcast %37 : vector<1x32xf32> to vector<16x32xf32>
      %39 = arith.addf %36, %38 : vector<16x32xf32>
      %c0_25 = arith.constant 0 : index
      %c0_26 = arith.constant 0 : index
      %40 = vector.load %arg8[%c0_25, %c0_26] : memref<16x32xf32, #tpu.memory_space<vmem>>, vector<16x32xf32>
      tpu.vector_store %arg8[%c0_25, %c0_26], %39 {strides = array<i32>} : memref<16x32xf32, #tpu.memory_space<vmem>>, vector<16x32xf32>,
    } else {
    }
    return
  }
  func.func @transform_0(%arg0: i32, %arg1: i32) -> (i32, i32) {
    %c0_i32 = arith.constant 0 : i32
    return %arg0, %arg1 : i32, i32
  }
  func.func @transform_1(%arg0: i32, %arg1: i32) -> (i32, i32) {
    %c0_i32 = arith.constant 0 : i32
    %c0_i32_0 = arith.constant 0 : i32
    return %arg1, %c0_i32 : i32, i32
  }
  func.func @transform_2(%arg0: i32, %arg1: i32) -> (i32, i32) {
    %c0_i32 = arith.constant 0 : i32
    %c0_i32_0 = arith.constant 0 : i32
    %c0_i32_1 = arith.constant 0 : i32
    return %c0_i32, %c0_i32_0 : i32, i32
  }
  func.func @transform_3(%arg0: i32, %arg1: i32) -> (i32, i32) {
    %c0_i32 = arith.constant 0 : i32
    %c0_i32_0 = arith.constant 0 : i32
    return %arg0, %c0_i32 : i32, i32
  }
  func.func @transform_4(%arg0: i32, %arg1: i32) -> (i32, i32) {
    %c0_i32 = arith.constant 0 : i32
    %c0_i32_0 = arith.constant 0 : i32
    %c0_i32_1 = arith.constant 0 : i32
    return %c0_i32, %c0_i32_0 : i32, i32
  }
  func.func @transform_5(%arg0: i32, %arg1: i32) -> (i32, i32) {
    %c0_i32 = arith.constant 0 : i32
    %c0_i32_0 = arith.constant 0 : i32
    %c0_i32_1 = arith.constant 0 : i32
    return %c0_i32, %c0_i32_0 : i32, i32
  }
  func.func @transform_6(%arg0: i32, %arg1: i32) -> (i32, i32) {
    %c0_i32 = arith.constant 0 : i32
    %c0_i32_0 = arith.constant 0 : i32
    return %arg0, %c0_i32 : i32, i32
  }
}

module attributes {stable_mosaic.version = 11 : i64} {
  func.func @_linear_kernel(%arg0: i32, %arg1: i32, %arg2: i32, %arg3: memref<16x32xf32, #tpu.memory_space<vmem>>, %arg4: memref<32x128xf32, #tpu.memory_space<vmem>>, %arg5: memref<1x128xf32, #tpu.memory_space<vmem>>, %arg6: memref<16x128xf32, #tpu.memory_space<vmem>>, %arg7: memref<16x128xf32, #tpu.memory_space<vmem>>) attributes {dimension_semantics = [#tpu.dimension_semantics<parallel>, #tpu.dimension_semantics<parallel>, #tpu.dimension_semantics<arbitrary>], iteration_bounds = array<i64: 1, 1, 1>, scalar_prefetch = 0 : i64, scratch_operands = 1 : i64, tpu.core_type = #tpu.core_type<tc>, window_params = [{transform_indices = @transform_0, window_bounds = array<i64: 16, 32>}, {transform_indices = @transform_1, window_bounds = array<i64: 32, 128>}, {transform_indices = @transform_2, window_bounds = array<i64: 1, 128>}, {transform_indices = @transform_3, window_bounds = array<i64: 16, 128>}]} {
    %c0_i32 = arith.constant 0 : i32
    %0 = arith.cmpi eq, %arg2, %c0_i32 : i32
    %1 = arith.extui %0 : i1 to i32
    %c0_i32_0 = arith.constant 0 : i32
    %2 = arith.cmpi ne, %1, %c0_i32_0 : i32
    scf.if %2 {
      %cst_10 = arith.constant 0.000000e+00 : f32
      %12 = vector.broadcast %cst_10 : f32 to vector<16x128xf32>
      %c0_11 = arith.constant 0 : index
      %c0_12 = arith.constant 0 : index
      %13 = vector.load %arg7[%c0_11, %c0_12] : memref<16x128xf32, #tpu.memory_space<vmem>>, vector<16x128xf32>
      tpu.vector_store %arg7[%c0_11, %c0_12], %12 {strides = array<i32>} : memref<16x128xf32, #tpu.memory_space<vmem>>, vector<16x128xf32>,
    } else {
    }
    %c0 = arith.constant 0 : index
    %c0_1 = arith.constant 0 : index
    %3 = vector.load %arg7[%c0, %c0_1] : memref<16x128xf32, #tpu.memory_space<vmem>>, vector<16x128xf32>
    %c0_2 = arith.constant 0 : index
    %c0_3 = arith.constant 0 : index
    %4 = vector.load %arg3[%c0_2, %c0_3] : memref<16x32xf32, #tpu.memory_space<vmem>>, vector<16x32xf32>
    %c0_4 = arith.constant 0 : index
    %c0_5 = arith.constant 0 : index
    %5 = vector.load %arg4[%c0_4, %c0_5] : memref<32x128xf32, #tpu.memory_space<vmem>>, vector<32x128xf32>
    %cst = arith.constant dense<0.000000e+00> : vector<16x128xf32>
    %6 = tpu.matmul %4, %5, %cst {dimension_numbers = #tpu.dot_dimension_numbers<[1], [0], [0], [1], [0, 0, 1, 1], [], []>} : vector<16x32xf32>, vector<32x128xf32>, vector<16x128xf32> -> vector<16x128xf32>
    %7 = arith.addf %3, %6 : vector<16x128xf32>
    %c0_6 = arith.constant 0 : index
    %c0_7 = arith.constant 0 : index
    %8 = vector.load %arg7[%c0_6, %c0_7] : memref<16x128xf32, #tpu.memory_space<vmem>>, vector<16x128xf32>
    tpu.vector_store %arg7[%c0_6, %c0_7], %7 {strides = array<i32>} : memref<16x128xf32, #tpu.memory_space<vmem>>, vector<16x128xf32>,
    %c0_i32_8 = arith.constant 0 : i32
    %9 = arith.cmpi eq, %arg2, %c0_i32_8 : i32
    %10 = arith.extui %9 : i1 to i32
    %c0_i32_9 = arith.constant 0 : i32
    %11 = arith.cmpi ne, %10, %c0_i32_9 : i32
    scf.if %11 {
      %c0_10 = arith.constant 0 : index
      %c0_11 = arith.constant 0 : index
      %12 = vector.load %arg7[%c0_10, %c0_11] : memref<16x128xf32, #tpu.memory_space<vmem>>, vector<16x128xf32>
      %c0_12 = arith.constant 0 : index
      %c0_13 = arith.constant 0 : index
      %13 = vector.load %arg5[%c0_12, %c0_13] : memref<1x128xf32, #tpu.memory_space<vmem>>, vector<1x128xf32>
      %14 = vector.broadcast %13 : vector<1x128xf32> to vector<16x128xf32>
      %15 = arith.addf %12, %14 : vector<16x128xf32>
      %c0_14 = arith.constant 0 : index
      %c0_15 = arith.constant 0 : index
      %16 = vector.load %arg6[%c0_14, %c0_15] : memref<16x128xf32, #tpu.memory_space<vmem>>, vector<16x128xf32>
      tpu.vector_store %arg6[%c0_14, %c0_15], %15 {strides = array<i32>} : memref<16x128xf32, #tpu.memory_space<vmem>>, vector<16x128xf32>,
    } else {
    }
    return
  }
  func.func @transform_0(%arg0: i32, %arg1: i32, %arg2: i32) -> (i32, i32) {
    %c0_i32 = arith.constant 0 : i32
    return %arg0, %arg2 : i32, i32
  }
  func.func @transform_1(%arg0: i32, %arg1: i32, %arg2: i32) -> (i32, i32) {
    %c0_i32 = arith.constant 0 : i32
    return %arg2, %arg1 : i32, i32
  }
  func.func @transform_2(%arg0: i32, %arg1: i32, %arg2: i32) -> (i32, i32) {
    %c0_i32 = arith.constant 0 : i32
    %c0_i32_0 = arith.constant 0 : i32
    return %c0_i32, %arg1 : i32, i32
  }
  func.func @transform_3(%arg0: i32, %arg1: i32, %arg2: i32) -> (i32, i32) {
    %c0_i32 = arith.constant 0 : i32
    return %arg0, %arg1 : i32, i32
  }
}

</mosaic_0001>

<bundles_post_ra>
// kernel: tile.8
= control target key start
LH: loop header
LB: loop body
LE: loop exit
PB: predicated region body
PF: predicated region fallthrough
CT: control target
= control target key end

     0   :  { %s22_s0 = inlined_call_operand.vmem [shape: f32[8], index: 0, kind: input, shape index: {}]   ;;  %s23_s1 = inlined_call_operand.vmem [shape: f32[2,8], index: 1, kind: output, shape index: {}]  }
   0x1   :  { %v4_v0 = vld [vmem:[%s22_s0] ss:$0 sm:$0xff] }
   0x2   :  { %5 = vst [vmem:[%s23_s1] sm:$0x3] %v4_v0 }

// kernel: tile.0
= control target key start
LH: loop header
LB: loop body
LE: loop exit
PB: predicated region body
PF: predicated region fallthrough
CT: control target
= control target key end

     0   :  { %s135_s0 = inlined_call_operand.vmem [shape: f32[2,8], index: 0, kind: input, shape index: {}]   ;;  %s136_s1 = inlined_call_operand.hbm [shape: f32[16,1], index: 1, kind: output, shape index: {}]  }
   0x1   :  { %v5_v0 = vld [vmem:[%s135_s0] sm:$0x3] }
   0x2   :  { %6 = vst [vmem:[#allocation2] sm:$0x3] %v5_v0 }
   0x3   :  { %2 = vsyncpa [#allocation1], 0  ;;  %s94_s0 = smov 127   ;;  %s95_s8 = smov 125   ;;  %vm8_vm0 = vcmask 7168  }
   0x4   :  { %s96_s9 = smov 126   ;;  %s97_s10 = smov 124  }
   0x5   :  { %s98_s11 = smov 123   ;;  %s99_s12 = smov 122  }
   0x6   :  { %s100_s13 = smov 121   ;;  %s101_s14 = smov [#allocation0]  }
   0x7   :  { %s56_s15 = sshll.u32 %s101_s14, 4  ;;  %s57_s15 = int_to_ptr.vmem [resolvable:$true] %s56_s15 }
   0x8   :  { %s70_s16 = scalar_lea.vmem %s57_s15, 256  ;;  %p75_p1 = scmp.lt.s32.totalorder %s57_s15, %s57_s15 }
   0x9   :  { %v10_v1 = vld [vmem:[#allocation2] sm:$0x3]   ;;  %p71_p0 = scmp.ne.s32.totalorder %s57_s15, %s70_s16  ;;  %p76_p2 = scmp.lt.s32.totalorder %s70_s16, %s70_s16 }
   0xa   :  { %v22_v2 = vld [vmem:[#allocation2] sm:$0x3]   ;;  %11 = vrot.lane.b32.xlu0 %v10_v1, %s94_s0 }
   0xb   :  { %23 = vrot.lane.b32.xlu1 %v22_v2, %s95_s8  ;;  %v16_v3 = vld [vmem:[#allocation2] sm:$0x3]   ;;  %p77_p3 = por %p76_p2, %p75_p1 }
   0xc   :  { %v28_v4 = vld [vmem:[#allocation2] sm:$0x3]  }
   0xd   :  { %v7_v5 = vld [vmem:[#allocation2] sm:$0x3]   ;;  %p78_p4 = pnand %p77_p3, %p71_p0 }
   0xe   :  { %9 = vst.msk [vmem:[#allocation0] ss:$8 sm:$0x3] %vm8_vm0, %v7_v5   ;;  %17 = vrot.lane.b32.xlu0 %v16_v3, %s96_s9  ;;  %v34_v6 = vld [vmem:[#allocation2] sm:$0x3]  }
   0xf   :  { %29 = vrot.lane.b32.xlu1 %v28_v4, %s97_s10  ;;  %v40_v7 = vld [vmem:[#allocation2] sm:$0x3]  }
  0x10   :  { %v46_v8 = vld [vmem:[#allocation2] sm:$0x3]  }
  0x12   :  { %35 = vrot.lane.b32.xlu0 %v34_v6, %s98_s11 }
  0x13   :  { %41 = vrot.lane.b32.xlu1 %v40_v7, %s99_s12 }
  0x16   :  { %47 = vrot.lane.b32.xlu0 %v46_v8, %s100_s13 }
  0x7c   :  { %v12_v9 = vpop.permute.xlu0 %11  }
  0x7d   :  { %v24_v10 = vpop.permute.xlu1 %23   ;;  %15 = vst.msk [vmem:[#allocation0 + $0x1] ss:$8 sm:$0x3] %vm8_vm0, %v12_v9  }
  0x7e   :  { %27 = vst.msk [vmem:[#allocation0 + $0x3] ss:$8 sm:$0x3] %vm8_vm0, %v24_v10  }
  0x80   :  { %v18_v11 = vpop.permute.xlu0 %17  }
  0x81   :  { %v30_v12 = vpop.permute.xlu1 %29   ;;  %21 = vst.msk [vmem:[#allocation0 + $0x2] ss:$8 sm:$0x3] %vm8_vm0, %v18_v11  }
  0x82   :  { %33 = vst.msk [vmem:[#allocation0 + $0x4] ss:$8 sm:$0x3] %vm8_vm0, %v30_v12  }
  0x84   :  { %v36_v13 = vpop.permute.xlu0 %35  }
  0x85   :  { %v42_v14 = vpop.permute.xlu1 %41   ;;  %39 = vst.msk [vmem:[#allocation0 + $0x5] ss:$8 sm:$0x3] %vm8_vm0, %v36_v13  }
  0x86   :  { %45 = vst.msk [vmem:[#allocation0 + $0x6] ss:$8 sm:$0x3] %vm8_vm0, %v42_v14  }
  0x88   :  { %v48_v15 = vpop.permute.xlu0 %47  }
  0x89   :  { %51 = vst.msk [vmem:[#allocation0 + $0x7] ss:$8 sm:$0x3] %vm8_vm0, %v48_v15  }
  0x8a   :  { %81 = shalt.err (!%p78_p4)
}
  0x8b   :  { %s82_s19 = scalar_lea.hbm %s136_s1, 256 }
  0x8c   :  { %p83_p5 = scmp.ne.s32.totalorder %s136_s1, %s82_s19  ;;  %p86_p6 = scmp.lt.u32.totalorder %s82_s19, %s136_s1 }
  0x8e   :  { %p88_p7 = pnand %p86_p6, %p83_p5 }
  0x90   :  { %91 = shalt.err (!%p88_p7)
}
  0x91   :  { %59 = dma.vmem_to_hbm [thread:$0]  %s57_s15, 256, %s136_s1, [#allocation1]  }
  0x92   :  { %92 = dma.done.wait [#allocation1], 256  }
  0x93   :  { %93 = vsyncadd [#allocation1], 4294967040 }
  0x94   :  { %61 = vsyncpa [#allocation1], 1 }

// kernel: decoder_only_forward.13
= control target key start
LH: loop header
LB: loop body
LE: loop exit
PB: predicated region body
PF: predicated region fallthrough
CT: control target
= control target key end

     0   :  { %8 = vsyncpa [#allocation4], 0  ;;  %s416_s0 = inlined_call_operand.hbm [shape: f32[16,32], index: 0, kind: input, shape index: {}]   ;;  %s417_s1 = inlined_call_operand.hbm [shape: f32[32,96], index: 1, kind: input, shape index: {}]   ;;  %s418_s2 = inlined_call_operand.hbm [shape: f32[1,96], index: 2, kind: input, shape index: {}]   ;;  %s419_s3 = inlined_call_operand.hbm [shape: f32[16,96], index: 3, kind: output, shape index: {}]  }
   0x1   :  { %9 = vsyncpa [#allocation7], 0 }
   0x2   :  { %10 = vsyncpa [#allocation5], 0  ;;  %s319_s12 = smov [#allocation6]   ;;  %s320_s14 = smov [#allocation3]  }
   0x3   :  { %s28_s13 = sshll.u32 %s319_s12, 4  ;;  %s16_s15 = sshll.u32 %s320_s14, 4  ;;  %s29_s13 = int_to_ptr.vmem [resolvable:$true] %s28_s13  ;;  %s346_s15 = int_to_ptr.vmem [resolvable:$true] %s16_s15 }
   0x4   :  { %s225_s18 = scalar_lea.hbm %s417_s1, 512 }
   0x5   :  { %p226_p0 = scmp.ne.s32.totalorder %s417_s1, %s225_s18  ;;  %p229_p1 = scmp.lt.u32.totalorder %s225_s18, %s417_s1 }
   0x7   :  { %p231_p2 = pnand %p229_p1, %p226_p0 }
   0x9   :  { %234 = shalt.err (!%p231_p2)
}
   0xa   :  { %s235_s23 = scalar_lea.vmem %s29_s13, 512  ;;  %p240_p4 = scmp.lt.s32.totalorder %s29_s13, %s29_s13 }
   0xb   :  { %p236_p3 = scmp.ne.s32.totalorder %s29_s13, %s235_s23  ;;  %p241_p5 = scmp.lt.s32.totalorder %s235_s23, %s235_s23 }
   0xd   :  { %p242_p6 = por %p241_p5, %p240_p4 }
   0xf   :  { %p243_p7 = pnand %p242_p6, %p236_p3 }
  0x11   :  { %246 = shalt.err (!%p243_p7)
}
  0x12   :  { %s321_s24 = smov 128   ;;  %s322_s25 = smov 8  }
  0x13   :  { %34 = dma.hbm_to_vmem [thread:$0]  %s417_s1, 512, %s29_s13, [#allocation7], %s321_s24, %s321_s24, %s322_s25  }
  0x14   :  { %s247_s30 = scalar_lea.hbm %s416_s0, 256 }
  0x15   :  { %p248_p8 = scmp.ne.s32.totalorder %s416_s0, %s247_s30  ;;  %p251_p9 = scmp.lt.u32.totalorder %s247_s30, %s416_s0 }
  0x17   :  { %p253_p10 = pnand %p251_p9, %p248_p8 }
  0x19   :  { %256 = shalt.err (!%p253_p10)
}
  0x1a   :  { %s257_s8 = scalar_lea.vmem %s346_s15, 256  ;;  %p262_p12 = scmp.lt.s32.totalorder %s346_s15, %s346_s15 }
  0x1b   :  { %p258_p11 = scmp.ne.s32.totalorder %s346_s15, %s257_s8  ;;  %p263_p13 = scmp.lt.s32.totalorder %s257_s8, %s257_s8 }
  0x1d   :  { %p264_p0 = por %p263_p13, %p262_p12 }
  0x1f   :  { %p265_p1 = pnand %p264_p0, %p258_p11 }
  0x21   :  { %268 = shalt.err (!%p265_p1)
}
  0x22   :  { %22 = dma.hbm_to_vmem [thread:$0]  %s416_s0, 256, %s346_s15, [#allocation4], %s321_s24, %s321_s24, %s322_s25  }
  0x23   :  { %s323_s10 = smov [#allocation8]   ;;  %s269_s14 = scalar_lea.hbm %s418_s2, 16 }
  0x24   :  { %s41_s11 = sshll.u32 %s323_s10, 4  ;;  %p270_p2 = scmp.ne.s32.totalorder %s418_s2, %s269_s14  ;;  %s42_s11 = int_to_ptr.vmem [resolvable:$true] %s41_s11 }
  0x25   :  { %p273_p3 = scmp.lt.u32.totalorder %s269_s14, %s418_s2 }
  0x27   :  { %p275_p4 = pnand %p273_p3, %p270_p2 }
  0x29   :  { %278 = shalt.err (!%p275_p4)
}
  0x2a   :  { %s279_s20 = scalar_lea.vmem %s42_s11, 16  ;;  %s283_s0 = scalar_lea.vmem %s42_s11, 32 }
  0x2b   :  { %p280_p5 = scmp.ne.s32.totalorder %s42_s11, %s279_s20  ;;  %p284_p6 = scmp.lt.s32.totalorder %s42_s11, %s42_s11 }
  0x2c   :  { %p285_p7 = scmp.lt.s32.totalorder %s283_s0, %s279_s20 }
  0x2e   :  { %p286_p8 = por %p285_p7, %p284_p6 }
  0x30   :  { %p287_p9 = pnand %p286_p8, %p280_p5 }
  0x32   :  { %290 = shalt.err (!%p287_p9)
}
  0x33   :  { %44 = dma.hbm_to_vmem [thread:$0]  %s418_s2, 16, %s42_s11, [#allocation7]  }
  0x34   :  { %313 = dma.done.wait [#allocation4], 256  }
  0x35   :  { %314 = vsyncadd [#allocation4], 4294967040 }
  0x36   :  { %315 = dma.done.wait [#allocation7], 528  }
  0x37   :  { %316 = vsyncadd [#allocation7], 4294966768  ;;  %vm58_vm0 = vcmask 785408   ;;  %v324_v0 = vmov 0.0   ;;  %vm69_vm1 = vcmask 261120   ;;  %v65_v1 = vld [vmem:[#allocation6] sm:$0xff] }
  0x38   :  { %60 = vst.msk [vmem:[#allocation2 + $0x8] sm:$0xff] %vm58_vm0, %v324_v0  ;;  %59 = vst.msk [vmem:[#allocation2] sm:$0xff] %vm58_vm0, %v324_v0  ;;  %v66_v2 = vld [vmem:[#allocation6 + $0x8] sm:$0xff]  ;;  %v67_v3 = vld [vmem:[#allocation6 + $0x10] sm:$0xff]  ;;  %s325_s2 = smov [#allocation9]  }
  0x39   :  { %v210_v4 = vpack.c.bf16 %v66_v2, %v65_v1  ;;  %v68_v5 = vld [vmem:[#allocation6 + $0x18] sm:$0xff]  ;;  %v63_v6 = vld [vmem:[#allocation3] sm:$0xff]  ;;  %v192_v15 = vld [vmem:[#allocation8] ss:$0 sm:$0xff]  ;;  %s177_s22 = sshll.u32 %s325_s2, 4  ;;  %s178_s22 = int_to_ptr.vmem [resolvable:$true] %s177_s22 }
  0x3a   :  { %v214_v7 = vpack.c.bf16 %v68_v5, %v67_v3  ;;  %207 = vmatprep.mubr.msk.f32.mxu0 %vm69_vm1, %v63_v6  ;;  %v64_v8 = vld [vmem:[#allocation3 + $0x8] sm:$0xff]  ;;  %s291_s23 = scalar_lea.vmem %s178_s22, 256  ;;  %p296_p11 = scmp.lt.s32.totalorder %s178_s22, %s178_s22 }
  0x3b   :  { %211 = vmatprep.subr.bf16.mxu0 %v210_v4  ;;  %p292_p10 = scmp.ne.s32.totalorder %s178_s22, %s291_s23  ;;  %p297_p12 = scmp.lt.s32.totalorder %s291_s23, %s291_s23 }
  0x3c   :  { %213 = vmatpush3.bf16.msra.mxu0 %v210_v4 }
  0x3d   :  { %215 = vmatprep.subr.bf16.mxu0 %v214_v7  ;;  %p298_p13 = por %p297_p12, %p296_p11 }
  0x3f   :  { %v62_v9 = vld [vmem:[#allocation2 + $0x8] sm:$0xff]  ;;  %v61_v10 = vld [vmem:[#allocation2] sm:$0xff]  ;;  %p299_p0 = pnand %p298_p13, %p292_p10 }
  0x40   :  { %217 = vmatpush3.bf16.msra.mxu0 %v214_v7 }
  0x43   :  { %208 = vmatmul.mubr.msk.f32.vlgmr.msra.gmra.mrb[0].mxu0 %vm69_vm1, %v64_v8 }
 0x116   :  { %v209_v11 = vpop.f32.mrb[0].mxu0 }
 0x117   :  { %v152_v12 = vadd.f32 %v209_v11, %v62_v9  ;;  %v142_v13 = vpop.f32.mrb[1].mxu0 }
 0x118   :  { %v151_v14 = vadd.f32 %v142_v13, %v61_v10 }
 0x119   :  { %155 = vst.msk [vmem:[#allocation2 + $0x8] sm:$0xff] %vm58_vm0, %v152_v12 }
 0x11a   :  { %154 = vst.msk [vmem:[#allocation2] sm:$0xff] %vm58_vm0, %v151_v14 }
 0x120   :  { %v160_v16 = vld [vmem:[#allocation2 + $0x8] sm:$0xff] }
 0x121   :  { %v159_v17 = vld [vmem:[#allocation2] sm:$0xff]  ;;  %v169_v18 = vadd.f32 %v192_v15, %v160_v16 }
 0x122   :  { %v168_v19 = vadd.f32 %v192_v15, %v159_v17 }
 0x123   :  { %171 = vst.msk [vmem:[#allocation9 + $0x8] sm:$0xff] %vm58_vm0, %v169_v18 }
 0x124   :  { %170 = vst.msk [vmem:[#allocation9] sm:$0xff] %vm58_vm0, %v168_v19 }
 0x125   :  { %302 = shalt.err (!%p299_p0)
}
 0x126   :  { %s303_s28 = scalar_lea.hbm %s419_s3, 256 }
 0x127   :  { %p304_p1 = scmp.ne.s32.totalorder %s419_s3, %s303_s28  ;;  %p307_p2 = scmp.lt.u32.totalorder %s303_s28, %s419_s3 }
 0x129   :  { %p309_p3 = pnand %p307_p2, %p304_p1 }
 0x12b   :  { %312 = shalt.err (!%p309_p3)
}
 0x12c   :  { %183 = dma.vmem_to_hbm [thread:$0]  %s178_s22, 256, %s419_s3, [#allocation5], %s321_s24, %s321_s24, %s322_s25  }
 0x12d   :  { %317 = dma.done.wait [#allocation5], 256  }
 0x12e   :  { %318 = vsyncadd [#allocation5], 4294967040 }
 0x12f   :  { %187 = vsyncpa [#allocation4], 1 }
 0x130   :  { %188 = vsyncpa [#allocation7], 1 }
 0x131   :  { %189 = vsyncpa [#allocation5], 1 }

// kernel: decoder_only_forward.12
= control target key start
LH: loop header
LB: loop body
LE: loop exit
PB: predicated region body
PF: predicated region fallthrough
CT: control target
= control target key end

     0   :  { %9 = vsyncpa [#allocation4], 0  ;;  %s500_s0 = inlined_call_operand.hbm [shape: f32[16,16], index: 0, kind: input, shape index: {}]   ;;  %s501_s1 = inlined_call_operand.hbm [shape: f32[16,32], index: 1, kind: input, shape index: {}]   ;;  %s502_s2 = inlined_call_operand.hbm [shape: f32[1,32], index: 2, kind: input, shape index: {}]   ;;  %s503_s3 = inlined_call_operand.hbm [shape: f32[16,1], index: 3, kind: input, shape index: {}]   ;;  %s504_s4 = inlined_call_operand.hbm [shape: f32[16,32], index: 4, kind: output, shape index: {}]  }
   0x1   :  { %10 = vsyncpa [#allocation7], 0 }
   0x2   :  { %11 = vsyncpa [#allocation10], 0 }
   0x3   :  { %12 = vsyncpa [#allocation5], 0  ;;  %s374_s15 = smov [#allocation6]   ;;  %s375_s17 = smov [#allocation3]  }
   0x4   :  { %s30_s16 = sshll.u32 %s374_s15, 4  ;;  %s18_s18 = sshll.u32 %s375_s17, 4  ;;  %s31_s16 = int_to_ptr.vmem [resolvable:$true] %s30_s16  ;;  %s408_s18 = int_to_ptr.vmem [resolvable:$true] %s18_s18 }
   0x5   :  { %s256_s21 = scalar_lea.hbm %s501_s1, 256 }
   0x6   :  { %p257_p0 = scmp.ne.s32.totalorder %s501_s1, %s256_s21  ;;  %p260_p1 = scmp.lt.u32.totalorder %s256_s21, %s501_s1 }
   0x8   :  { %p262_p2 = pnand %p260_p1, %p257_p0 }
   0xa   :  { %265 = shalt.err (!%p262_p2)
}
   0xb   :  { %s266_s26 = scalar_lea.vmem %s31_s16, 256  ;;  %p271_p4 = scmp.lt.s32.totalorder %s31_s16, %s31_s16 }
   0xc   :  { %p267_p3 = scmp.ne.s32.totalorder %s31_s16, %s266_s26  ;;  %p272_p5 = scmp.lt.s32.totalorder %s266_s26, %s266_s26 }
   0xe   :  { %p273_p6 = por %p272_p5, %p271_p4 }
  0x10   :  { %p274_p7 = pnand %p273_p6, %p267_p3 }
  0x12   :  { %277 = shalt.err (!%p274_p7)
}
  0x13   :  { %s376_s27 = smov 128   ;;  %s377_s28 = smov 8  }
  0x14   :  { %36 = dma.hbm_to_vmem [thread:$0]  %s501_s1, 256, %s31_s16, [#allocation7], %s376_s27, %s376_s27, %s377_s28  }
  0x15   :  { %s278_s7 = scalar_lea.hbm %s500_s0, 256 }
  0x16   :  { %p279_p8 = scmp.ne.s32.totalorder %s500_s0, %s278_s7  ;;  %p282_p9 = scmp.lt.u32.totalorder %s278_s7, %s500_s0 }
  0x18   :  { %p284_p10 = pnand %p282_p9, %p279_p8 }
  0x1a   :  { %287 = shalt.err (!%p284_p10)
}
  0x1b   :  { %s288_s12 = scalar_lea.vmem %s408_s18, 256  ;;  %p293_p12 = scmp.lt.s32.totalorder %s408_s18, %s408_s18 }
  0x1c   :  { %p289_p11 = scmp.ne.s32.totalorder %s408_s18, %s288_s12  ;;  %p294_p13 = scmp.lt.s32.totalorder %s288_s12, %s288_s12 }
  0x1e   :  { %p295_p0 = por %p294_p13, %p293_p12 }
  0x20   :  { %p296_p1 = pnand %p295_p0, %p289_p11 }
  0x22   :  { %299 = shalt.err (!%p296_p1)
}
  0x23   :  { %24 = dma.hbm_to_vmem [thread:$0]  %s500_s0, 256, %s408_s18, [#allocation4], %s376_s27, %s376_s27, %s377_s28  }
  0x24   :  { %s378_s14 = smov [#allocation8]   ;;  %s379_s16 = smov [#allocation9]  }
  0x25   :  { %s43_s15 = sshll.u32 %s378_s14, 4  ;;  %s52_s17 = sshll.u32 %s379_s16, 4  ;;  %s44_s15 = int_to_ptr.vmem [resolvable:$true] %s43_s15  ;;  %s445_s17 = int_to_ptr.vmem [resolvable:$true] %s52_s17 }
  0x26   :  { %s300_s21 = scalar_lea.hbm %s502_s2, 16 }
  0x27   :  { %p301_p2 = scmp.ne.s32.totalorder %s502_s2, %s300_s21  ;;  %p304_p3 = scmp.lt.u32.totalorder %s300_s21, %s502_s2 }
  0x29   :  { %p306_p4 = pnand %p304_p3, %p301_p2 }
  0x2b   :  { %309 = shalt.err (!%p306_p4)
}
  0x2c   :  { %s310_s0 = scalar_lea.vmem %s44_s15, 16  ;;  %s314_s18 = scalar_lea.vmem %s44_s15, 32 }
  0x2d   :  { %p311_p5 = scmp.ne.s32.totalorder %s44_s15, %s310_s0  ;;  %p315_p6 = scmp.lt.s32.totalorder %s44_s15, %s44_s15 }
  0x2e   :  { %p316_p7 = scmp.lt.s32.totalorder %s314_s18, %s310_s0 }
  0x30   :  { %p317_p8 = por %p316_p7, %p315_p6 }
  0x32   :  { %p318_p9 = pnand %p317_p8, %p311_p5 }
  0x34   :  { %321 = shalt.err (!%p318_p9)
}
  0x35   :  { %46 = dma.hbm_to_vmem [thread:$0]  %s502_s2, 16, %s44_s15, [#allocation7]  }
  0x36   :  { %s322_s6 = scalar_lea.hbm %s503_s3, 256 }
  0x37   :  { %p323_p10 = scmp.ne.s32.totalorder %s503_s3, %s322_s6  ;;  %p326_p11 = scmp.lt.u32.totalorder %s322_s6, %s503_s3 }
  0x39   :  { %p328_p12 = pnand %p326_p11, %p323_p10 }
  0x3b   :  { %331 = shalt.err (!%p328_p12)
}
  0x3c   :  { %s332_s11 = scalar_lea.vmem %s445_s17, 256  ;;  %p337_p0 = scmp.lt.s32.totalorder %s445_s17, %s445_s17 }
  0x3d   :  { %p333_p13 = scmp.ne.s32.totalorder %s445_s17, %s332_s11  ;;  %p338_p1 = scmp.lt.s32.totalorder %s332_s11, %s332_s11 }
  0x3f   :  { %p339_p2 = por %p338_p1, %p337_p0 }
  0x41   :  { %p340_p3 = pnand %p339_p2, %p333_p13 }
  0x43   :  { %343 = shalt.err (!%p340_p3)
}
  0x44   :  { %58 = dma.hbm_to_vmem [thread:$0]  %s503_s3, 256, %s445_s17, [#allocation10], %s376_s27, %s376_s27, %s377_s28  }
  0x45   :  { %366 = dma.done.wait [#allocation4], 256  }
  0x46   :  { %367 = vsyncadd [#allocation4], 4294967040 }
  0x47   :  { %368 = dma.done.wait [#allocation7], 272  }
  0x48   :  { %369 = vsyncadd [#allocation7], 4294967024 }
  0x49   :  { %370 = dma.done.wait [#allocation10], 256  }
  0x4a   :  { %371 = vsyncadd [#allocation10], 4294967040  ;;  %vm76_vm0 = vcmask 261120   ;;  %v380_v0 = vmov 0   ;;  %v381_v1 = vmov 0.0   ;;  %vm85_vm1 = vcmask 130048  }
  0x4b   :  { %255 = vset.pattern.permute.xlu0 %v380_v0  ;;  %78 = vst.msk [vmem:[#allocation2 + $0x8] sm:$0xff] %vm76_vm0, %v381_v1  ;;  %77 = vst.msk [vmem:[#allocation2] sm:$0xff] %vm76_vm0, %v381_v1  ;;  %v83_v2 = vld [vmem:[#allocation6] sm:$0xff]  ;;  %v84_v3 = vld [vmem:[#allocation6 + $0x8] sm:$0xff]  ;;  %v186_v14 = vlaneseq  ;;  %s382_s3 = smov [#allocation11]  }
  0x4c   :  { %v81_v4 = vld [vmem:[#allocation3] sm:$0xff]  ;;  %v242_v5 = vpack.c.bf16 %v84_v3, %v83_v2  ;;  %v192_v7 = vld [vmem:[#allocation9 + $0x8] sm:$0xff]  ;;  %s214_s1 = sshll.u32 %s382_s3, 4  ;;  %s215_s1 = int_to_ptr.vmem [resolvable:$true] %s214_s1 }
  0x4d   :  { %239 = vmatprep.mubr.msk.f32.mxu0 %vm85_vm1, %v81_v4  ;;  %v191_v6 = vld [vmem:[#allocation9] sm:$0xff]  ;;  %v187_v17 = vand.u32 127, %v186_v14  ;;  %v230_v18 = vld [vmem:[#allocation8] ss:$0 sm:$0xff]  ;;  %s344_s13 = scalar_lea.vmem %s215_s1, 256  ;;  %p349_p5 = scmp.lt.s32.totalorder %s215_s1, %s215_s1 }
  0x4e   :  { %195 = vperm.xlu0 %255, %v191_v6   ;;  %243 = vmatprep.subr.bf16.mxu0 %v242_v5  ;;  %v82_v8 = vld [vmem:[#allocation3 + $0x8] sm:$0xff]  ;;  %p345_p4 = scmp.ne.s32.totalorder %s215_s1, %s344_s13  ;;  %p350_p6 = scmp.lt.s32.totalorder %s344_s13, %s344_s13 }
  0x4f   :  { %245 = vmatpush3.bf16.msra.mxu0 %v242_v5  ;;  %vm190_vm2 = vcmp.eq.s32.totalorder %v187_v17, 0 }
  0x50   :  { %p351_p7 = por %p350_p6, %p349_p5 }
  0x52   :  { %200 = vperm.xlu0 %255, %v192_v7   ;;  %240 = vmatmul.mubr.msk.f32.vlgmr.msra.gmra.mrb[0].mxu0 %vm85_vm1, %v82_v8  ;;  %v80_v9 = vld [vmem:[#allocation2 + $0x8] sm:$0xff]  ;;  %v79_v10 = vld [vmem:[#allocation2] sm:$0xff]  ;;  %p352_p8 = pnand %p351_p7, %p345_p4 }
  0xcd   :  { %v196_v16 = vpop.permute.xlu0 %195 }
  0xce   :  { %v203_v25 = vsel %vm190_vm2, %v196_v16, 0.0 }
  0xd1   :  { %v201_v19 = vpop.permute.xlu0 %200 }
  0xd2   :  { %v204_v24 = vsel %vm190_vm2, %v201_v19, 0.0 }
 0x125   :  { %v241_v11 = vpop.f32.mrb[0].mxu0 }
 0x126   :  { %v168_v12 = vadd.f32 %v241_v11, %v80_v9  ;;  %v158_v13 = vpop.f32.mrb[1].mxu0 }
 0x127   :  { %v167_v15 = vadd.f32 %v158_v13, %v79_v10 }
 0x128   :  { %171 = vst.msk [vmem:[#allocation2 + $0x8] sm:$0xff] %vm76_vm0, %v168_v12 }
 0x129   :  { %170 = vst.msk [vmem:[#allocation2] sm:$0xff] %vm76_vm0, %v167_v15 }
 0x12f   :  { %v176_v20 = vld [vmem:[#allocation2 + $0x8] sm:$0xff] }
 0x130   :  { %v175_v21 = vld [vmem:[#allocation2] sm:$0xff]  ;;  %v185_v22 = vadd.f32 %v230_v18, %v176_v20 }
 0x131   :  { %v184_v23 = vadd.f32 %v230_v18, %v175_v21 }
 0x132   :  { %v206_v26 = vadd.f32 %v204_v24, %v185_v22 }
 0x133   :  { %v205_v27 = vadd.f32 %v203_v25, %v184_v23 }
 0x134   :  { %208 = vst.msk [vmem:[#allocation11 + $0x8] sm:$0xff] %vm76_vm0, %v206_v26 }
 0x135   :  { %207 = vst.msk [vmem:[#allocation11] sm:$0xff] %vm76_vm0, %v205_v27 }
 0x136   :  { %355 = shalt.err (!%p352_p8)
}
 0x137   :  { %s356_s16 = scalar_lea.hbm %s504_s4, 256 }
 0x138   :  { %p357_p9 = scmp.ne.s32.totalorder %s504_s4, %s356_s16  ;;  %p360_p10 = scmp.lt.u32.totalorder %s356_s16, %s504_s4 }
 0x13a   :  { %p362_p11 = pnand %p360_p10, %p357_p9 }
 0x13c   :  { %365 = shalt.err (!%p362_p11)
}
 0x13d   :  { %220 = dma.vmem_to_hbm [thread:$0]  %s215_s1, 256, %s504_s4, [#allocation5], %s376_s27, %s376_s27, %s377_s28  }
 0x13e   :  { %372 = dma.done.wait [#allocation5], 256  }
 0x13f   :  { %373 = vsyncadd [#allocation5], 4294967040 }
 0x140   :  { %224 = vsyncpa [#allocation4], 1 }
 0x141   :  { %225 = vsyncpa [#allocation7], 1 }
 0x142   :  { %226 = vsyncpa [#allocation10], 1 }
 0x143   :  { %227 = vsyncpa [#allocation5], 1 }

// kernel: decoder_only_forward.14
= control target key start
LH: loop header
LB: loop body
LE: loop exit
PB: predicated region body
PF: predicated region fallthrough
CT: control target
= control target key end

     0   :  { %6 = vsyncpa [#allocation3], 0  ;;  %s1371_s0 = inlined_call_operand.hbm [shape: f32[3,2,4,8,8], index: 0, kind: input, shape index: {}]   ;;  %s1372_s1 = inlined_call_operand.hbm [shape: f32[2,4,8,8], index: 1, kind: output, shape index: {}]  }
   0x1   :  { %8 = vsyncpa [#allocation3 + $0x1], 0 }
   0x2   :  { %9 = vsyncpa [#allocation4], 0 }
   0x3   :  { %11 = vsyncpa [#allocation4 + $0x1], 0  ;;  %s1167_s6 = smov 0   ;;  %s1169_s7 = smov 0  }
   0x4   :  { %s1171_s8 = smov 0   ;;  %s1173_s9 = smov 0  }
   0x5 LB: > { %s1188_s10 = sadd.s32 4294967295, %s1144_s9   ;;  %s910_s11 = sadd.s32 4294967294, %s1144_s9   ;;  %s1144_s9 = sphi %s1173_s9, %s1380_s9   ;;  %s1140_s8 = sphi %s1171_s8, %s1379_s8   ;;  %s1136_s7 = sphi %s1169_s7, %s1378_s7   ;;  %s1132_s6 = sphi %s1167_s6, %s1377_s6  }
   0x6   : > { %s1192_s12 = sadd.s32 1, %s1144_s9   ;;  %s24_s13 = sadd.s32 1, %s1140_s8 }
   0x7   : > { %s21_s14 = ssub.s32 %s1144_s9, %s1192_s12  ;;  %p31_p0 = scmp.ne.s32.totalorder %s1140_s8, %s1136_s7 }
   0x8   : > { %p22_p1 = scmp.eq.s32.totalorder %s21_s14, 0  ;;  %p32_p2 = scmp.eq.s32.totalorder %s1144_s9, 0 }
   0x9   : > { %p37_p3 = scmp.ne.s32.totalorder %s1136_s7, %s1132_s6  ;;  %p38_p4 = scmp.eq.s32.totalorder %s1188_s10, 0 }
   0xa   : > { %s1204_s15 = scalar_select %p22_p1, %s1140_s8, %s24_s13  }
   0xb   : > { %p1206_p5 = por %p32_p2, %p31_p0  ;;  %p1210_p6 = por %p38_p4, %p37_p3 }
   0xc   : > { %p61_p7 = scmp.eq.s32.totalorder %s1188_s10, 1  ;;  %p67_p8 = scmp.eq.s32.totalorder %s910_s11, 1 }
   0xd   : > { %p912_p11 = scmp.ge.s32.totalorder %s1144_s9, 2 }
   0xe   : > { %p1215_p9 = por %p61_p7, %p31_p0  ;;  %p1219_p10 = por %p67_p8, %p37_p3 }
   0xf   : > { %83 = sbr.rel (%p912_p11) target bundleno = 36 (0x24), region = 16 }
  0x16   : > { %s87_s20 = sand.u32 1, %s1140_s8   ;;  %s944_s22 = sshll.u32 %s1144_s9, 9 }
  0x17   : > { %s1002_s21 = smul.u32 96, %s87_s20  ;;  %s1146_s23 = smov 1024  }
  0x18   : > { %1005 = sst [smem:[#allocation7]] (%p1206_p5), %s1146_s23  ;;  %s97_s27 = scalar_lea.hbm %s1371_s0, %s944_s22 }
  0x19   : > { %s1004_s24 = scalar_select %p1206_p5, [#allocation0], [#allocation8] }
  0x1a   : > { %s91_s29 = scalar_lea.vmem [#allocation2], %s1002_s21  ;;  %s1147_s2 = smov 512  }
  0x1b   : > { %s102_s28 = sld [smem:[%s1004_s24]]   ;;  %s110_s30 = sshll.u32 %s91_s29, 4  ;;  %s111_s30 = int_to_ptr.vmem [resolvable:$true] %s110_s30 }
  0x1c   : > { %1006 = sst [smem:[#allocation7 + $0x1]] (%p1206_p5), %s1147_s2  ;;  %s1148_s3 = smov 4  }
  0x1d   : > { %1007 = sst [smem:[#allocation7 + $0x2]] (%p1206_p5), %s1148_s3  ;;  %s1149_s4 = smov 128  }
  0x1e   : > { %1008 = sst [smem:[#allocation7 + $0x3]] (%p1206_p5), %s1149_s4  ;;  %s1150_s5 = smov 8  }
  0x1f   : > { %1009 = sst [smem:[#allocation7 + $0x4]] (%p1206_p5), %s1149_s4  ;;  %s88_s14 = scalar_lea.sflag [#allocation3], %s87_s20 }
  0x20   : > { %1010 = sst [smem:[#allocation7 + $0x5]] (%p1206_p5), %s1150_s5  ;;  %s1151_s21 = smov [#allocation6]  }
  0x21   : > { %s915_s11 = sshll.u32 %s102_s28, 26 }
  0x22   : > { %s916_s13 = sadd.s32 134217728, %s915_s11 }
  0x23   : > { %1011 = dma.general (%p1206_p5), %s97_s27, 1536, %s111_s30, %s88_s14, %s1151_s21, [#allocation7], %s916_s13, 0  }
  0x24 PF: > { %p917_p12 = scmp.ge.s32.totalorder %s1144_s9, 1  ;;  %p131_p13 = scmp.lt.s32.totalorder %s1144_s9, 3 }
  0x26   : > { %p132_p0 = pnand %p917_p12, %p131_p13 }
  0x27   : > { %s1250_s22 = sand.u32 (!%p132_p0), 1, %s1136_s7  }
  0x28   : > { %135 = sbr.rel (%p132_p0) target bundleno = 815 (0x32f), region = 24  ;;  %s138_s24 = scalar_lea.sflag (!%p132_p0), [#allocation3], %s1250_s22 }
  0x29   : > { %s1003_s23 = smul.u32 (!%p132_p0), 96, %s1250_s22 }
  0x2b   : > { %s1254_s25 = scalar_lea.vmem (!%p132_p0), [#allocation2], %s1003_s23 }
  0x2f   : > { %1123 = dma.done.wait (%p1210_p6), %s138_s24, 1536  }
  0x30   : > { %1125 = vsyncadd (%p1210_p6), %s138_s24, 4294965760  ;;  %v1152_v0 = vmov 0.0   ;;  %vm1153_vm0 = vmmov 0   ;;  %vm178_vm1 = vcmask 64512   ;;  %v919_v1 = vld [vmem:[%s1254_s25 + $0x20] sm:$0xff]  ;;  %v920_v3 = vld [vmem:[%s1254_s25 + $0x28] sm:$0xff] }
  0x31   : > { %962 = vmatprep.subr.mxu0 %v1152_v0  ;;  %964 = vmatprep.mubr.msk.f32.mxu0 %vm1153_vm0, %v1152_v0  ;;  %v160_v2 = vld [vmem:[%s1254_s25] sm:$0xff]  ;;  %v161_v5 = vld [vmem:[%s1254_s25 + $0x8] sm:$0xff]  ;;  %v162_v6 = vld [vmem:[%s1254_s25 + $0x10] sm:$0xff]  ;;  %s918_s16 = sshll.u32 %s1250_s22, 5  ;;  %s945_s26 = sshll.u32 %s1188_s10, 9 }
  0x32   : > { %967 = vmatprep.subr.mxu1 %v1152_v0  ;;  %969 = vmatprep.mubr.msk.f32.mxu1 %vm1153_vm0, %v1152_v0  ;;  %v164_v4 = vmul.f32 0.35355338, %v160_v2  ;;  %v921_v7 = vld [vmem:[%s1254_s25 + $0x30] sm:$0xff]  ;;  %v165_v8 = vmul.f32 0.35355338, %v161_v5  ;;  %v163_v9 = vld [vmem:[%s1254_s25 + $0x18] sm:$0xff]  ;;  %s1326_s29 = scalar_lea.hbm %s1372_s1, %s945_s26 }
  0x33   : > { %963 = vmatpush3.xpose.msk.msra.mxu0 %vm178_vm1, %v919_v1  ;;  %968 = vmatpush3.xpose.msk.msra.mxu1 %vm178_vm1, %v920_v3  ;;  %v922_v10 = vld [vmem:[%s1254_s25 + $0x38] sm:$0xff]  ;;  %v166_v11 = vmul.f32 0.35355338, %v162_v6  ;;  %v167_v12 = vmul.f32 0.35355338, %v163_v9  ;;  %v923_v45 = vld [vmem:[%s1254_s25 + $0x40] sm:$0xff] }
  0x34   : > { %972 = vmatprep.subr.mxu0 %v1152_v0  ;;  %977 = vmatprep.subr.mxu1 %v1152_v0  ;;  %v924_v46 = vld [vmem:[%s1254_s25 + $0x48] sm:$0xff]  ;;  %v925_v53 = vld [vmem:[%s1254_s25 + $0x50] sm:$0xff]  ;;  %v926_v57 = vld [vmem:[%s1254_s25 + $0x58] sm:$0xff]  ;;  %s159_s17 = scalar_lea.vmem [#allocation5], %s918_s16  ;;  %s824_s10 = scalar_lea.sflag [#allocation4], %s1250_s22 }
  0x35   : > { %s837_s20 = sshll.u32 %s159_s17, 4  ;;  %s1154_s2 = smov [#allocation5]   ;;  %s1319_s20 = int_to_ptr.vmem [resolvable:$true] %s837_s20 }
  0x36   : > { %965 = vmatmul.mubr.msk.f32.vlgmr.msra.gmra.mrb[0].mxu0 %vm178_vm1, %v164_v4  ;;  %970 = vmatmul.mubr.msk.f32.vlgmr.msra.gmra.mrb[0].mxu1 %vm178_vm1, %v165_v8  ;;  %s1078_s30 = scalar_lea.vmem %s1319_s20, 512  ;;  %s1082_s3 = sshll.u32 %s1154_s2, 4  ;;  %s1083_s3 = int_to_ptr.vmem [resolvable:$false] %s1082_s3 }
  0x37   : > { %973 = vmatpush3.xpose.msk.msra.mxu0 %vm178_vm1, %v921_v7  ;;  %974 = vmatprep.mubr.msk.f32.mxu0 %vm1153_vm0, %v1152_v0  ;;  %p1079_p1 = scmp.ne.s32.totalorder %s1319_s20, %s1078_s30  ;;  %s1084_s4 = scalar_lea.vmem %s1083_s3, 1024 }
  0x38   : > { %978 = vmatpush3.xpose.msk.msra.mxu1 %vm178_vm1, %v922_v10  ;;  %979 = vmatprep.mubr.msk.f32.mxu1 %vm1153_vm0, %v1152_v0  ;;  %p1085_p4 = scmp.lt.s32.totalorder %s1319_s20, %s1083_s3  ;;  %p1086_p5 = scmp.lt.s32.totalorder %s1084_s4, %s1078_s30 }
  0x39   : > { %982 = vmatprep.subr.mxu0 %v1152_v0  ;;  %987 = vmatprep.subr.mxu1 %v1152_v0  ;;  %p1080_p2 = pnand %p1079_p1, %p1215_p9 }
  0x3a   : > { %975 = vmatmul.mubr.msk.f32.vlgmr.msra.gmra.mrb[2].mxu0 %vm178_vm1, %v166_v11  ;;  %p1087_p6 = por %p1086_p5, %p1085_p4 }
  0x3b   : > { %980 = vmatmul.mubr.msk.f32.vlgmr.msra.gmra.mrb[2].mxu1 %vm178_vm1, %v167_v12  ;;  %984 = vmatprep.mubr.msk.f32.mxu0 %vm1153_vm0, %v1152_v0  ;;  %p1081_p3 = pneg %p1080_p2 }
  0x3c   : > { %989 = vmatprep.mubr.msk.f32.mxu1 %vm1153_vm0, %v1152_v0  ;;  %983 = vmatpush3.msra.mxu0 %v923_v45 }
  0x3d   : > { %992 = vmatprep.subr.mxu0 %v1152_v0  ;;  %988 = vmatpush3.msra.mxu1 %v924_v46  ;;  %p1088_p7 = pnand %p1087_p6, %p1081_p3 }
  0x3e   : > { %997 = vmatprep.subr.mxu1 %v1152_v0 }
 0x109   : > { %v251_v13 = vpop.f32.mrb[0].mxu0  ;;  %v327_v14 = vpop.f32.mrb[0].mxu1 }
 0x10a   : > { %v966_v15 = vpop.f32.mrb[1].mxu0  ;;  %v483_v16 = vsel %vm178_vm1, %v251_v13, -inf  ;;  %v971_v17 = vpop.f32.mrb[1].mxu1  ;;  %v486_v18 = vsel %vm178_vm1, %v327_v14, -inf }
 0x10b   : > { %484 = vmax.xlane.f32.xlu0 %v483_v16 }
 0x10d   : > { %v403_v19 = vpop.f32.mrb[2].mxu0 }
 0x10e   : > { %v976_v20 = vpop.f32.mrb[3].mxu0  ;;  %v489_v21 = vsel %vm178_vm1, %v403_v19, -inf  ;;  %v479_v22 = vpop.f32.mrb[2].mxu1 }
 0x10f   : > { %487 = vmax.xlane.f32.xlu0 %v486_v18  ;;  %490 = vmax.xlane.f32.xlu1 %v489_v21  ;;  %v981_v23 = vpop.f32.mrb[3].mxu1  ;;  %v492_v24 = vsel %vm178_vm1, %v479_v22, -inf }
 0x113   : > { %493 = vmax.xlane.f32.xlu1 %v492_v24 }
 0x198   : > { %v485_v25 = vpop.xlane.xlu0 %484 }
 0x199   : > { %v495_v26 = vsub.f32 %v251_v13, %v485_v25 }
 0x19b   : > { %v499_v27 = vmul.f32 1.442695, %v495_v26 }
 0x19c   : > { %v488_v28 = vpop.xlane.xlu0 %487  ;;  %v491_v29 = vpop.xlane.xlu1 %490 }
 0x19d   : > { %1062 = vpow2.f32 %v499_v27  ;;  %v496_v30 = vsub.f32 %v327_v14, %v488_v28  ;;  %v497_v31 = vsub.f32 %v403_v19, %v491_v29 }
 0x19f   : > { %v501_v32 = vmul.f32 1.442695, %v496_v30  ;;  %v503_v33 = vmul.f32 1.442695, %v497_v31 }
 0x1a0   : > { %v494_v34 = vpop.xlane.xlu1 %493 }
 0x1a1   : > { %1064 = vpow2.f32 %v501_v32  ;;  %v498_v35 = vsub.f32 %v479_v22, %v494_v34 }
 0x1a2   : > { %1066 = vpow2.f32 %v503_v33 }
 0x1a3   : > { %v505_v36 = vmul.f32 1.442695, %v498_v35 }
 0x1a5   : > { %1068 = vpow2.f32 %v505_v36 }
 0x1a7   : > { %v1063_v37 = vpop.eup %1062 }
 0x1a8   : > { %v507_v38 = vsel %vm178_vm1, %v1063_v37, 0.0 }
 0x1a9   : > { %508 = vadd.xlane.f32.xlu0 %v507_v38 }
 0x1ab   : > { %v1065_v39 = vpop.eup %1064 }
 0x1ac   : > { %v1067_v40 = vpop.eup %1066  ;;  %v510_v41 = vsel %vm178_vm1, %v1065_v39, 0.0 }
 0x1ad   : > { %511 = vadd.xlane.f32.xlu1 %v510_v41  ;;  %v513_v42 = vsel %vm178_vm1, %v1067_v40, 0.0 }
 0x1ae   : > { %514 = vadd.xlane.f32.xlu0 %v513_v42 }
 0x1af   : > { %v1069_v43 = vpop.eup %1068 }
 0x1b0   : > { %v516_v44 = vsel %vm178_vm1, %v1069_v43, 0.0 }
 0x1b1   : > { %517 = vadd.xlane.f32.xlu1 %v516_v44 }
 0x236   : > { %v509_v47 = vpop.xlane.xlu0 %508 }
 0x237   : > { %1070 = vrcp.f32 %v509_v47 }
 0x23a   : > { %v512_v48 = vpop.xlane.xlu1 %511 }
 0x23b   : > { %v515_v49 = vpop.xlane.xlu0 %514  ;;  %1072 = vrcp.f32 %v512_v48 }
 0x23c   : > { %1074 = vrcp.f32 %v515_v49 }
 0x23e   : > { %v518_v50 = vpop.xlane.xlu1 %517 }
 0x23f   : > { %1076 = vrcp.f32 %v518_v50 }
 0x241   : > { %v1071_v51 = vpop.eup %1070 }
 0x242   : > { %v520_v52 = vmul.f32 %v1071_v51, %v1063_v37 }
 0x244   : > { %985 = vmatmul.mubr.msk.f32.vlgmr.msra.gmra.mrb[4].mxu0 %vm178_vm1, %v520_v52 }
 0x245   : > { %v1073_v54 = vpop.eup %1072  ;;  %993 = vmatpush3.msra.mxu0 %v925_v53  ;;  %994 = vmatprep.mubr.msk.f32.mxu0 %vm1153_vm0, %v1152_v0 }
 0x246   : > { %v1075_v55 = vpop.eup %1074  ;;  %v522_v56 = vmul.f32 %v1073_v54, %v1065_v39 }
 0x247   : > { %v524_v58 = vmul.f32 %v1075_v55, %v1067_v40 }
 0x248   : > { %990 = vmatmul.mubr.msk.f32.vlgmr.msra.gmra.mrb[4].mxu1 %vm178_vm1, %v522_v56 }
 0x249   : > { %v1077_v59 = vpop.eup %1076  ;;  %995 = vmatmul.mubr.msk.f32.vlgmr.msra.gmra.mrb[6].mxu0 %vm178_vm1, %v524_v58  ;;  %998 = vmatpush3.msra.mxu1 %v926_v57 }
 0x24a   : > { %v526_v60 = vmul.f32 %v1077_v59, %v1069_v43  ;;  %999 = vmatprep.mubr.msk.f32.mxu1 %vm1153_vm0, %v1152_v0 }
 0x24c   : > { %1000 = vmatmul.mubr.msk.f32.vlgmr.msra.gmra.mrb[6].mxu1 %vm178_vm1, %v526_v60 }
 0x317   : > { %v596_v61 = vpop.f32.mrb[4].mxu0 }
 0x318   : > { %819 = vst.msk [vmem:[%s159_s17] sm:$0xff] %vm178_vm1, %v596_v61  ;;  %v986_v62 = vpop.f32.mrb[5].mxu0 }
 0x31b   : > { %v669_v63 = vpop.f32.mrb[4].mxu1 }
 0x31c   : > { %820 = vst.msk [vmem:[%s159_s17 + $0x8] sm:$0xff] %vm178_vm1, %v669_v63  ;;  %v742_v0 = vpop.f32.mrb[6].mxu0  ;;  %v991_v1 = vpop.f32.mrb[5].mxu1 }
 0x31d   : > { %821 = vst.msk [vmem:[%s159_s17 + $0x10] sm:$0xff] %vm178_vm1, %v742_v0  ;;  %v996_v2 = vpop.f32.mrb[7].mxu0 }
 0x31f   : > { %v815_v3 = vpop.f32.mrb[6].mxu1 }
 0x320   : > { %822 = vst.msk [vmem:[%s159_s17 + $0x18] sm:$0xff] %vm178_vm1, %v815_v3  ;;  %v1001_v4 = vpop.f32.mrb[7].mxu1 }
 0x321   : > { %1091 = shalt.err (!%p1088_p7)
}
 0x322   : > { %s1092_s5 = scalar_lea.hbm %s1326_s29, 512  ;;  %s1096_s14 = scalar_lea.hbm %s1372_s1, 1024 }
 0x323   : > { %p1093_p8 = scmp.ne.s32.totalorder %s1326_s29, %s1092_s5  ;;  %p1097_p0 = scmp.lt.u32.totalorder %s1326_s29, %s1372_s1 }
 0x324   : > { %p1098_p1 = scmp.lt.u32.totalorder %s1096_s14, %s1092_s5  ;;  %p1100_p3 = scmp.lt.u32.totalorder %s1092_s5, %s1326_s29 }
 0x325   : > { %p1094_p12 = pnand %p1093_p8, %p1215_p9 }
 0x326   : > { %p1099_p2 = por %p1098_p1, %p1097_p0 }
 0x327   : > { %p1095_p13 = pneg %p1094_p12 }
 0x328   : > { %p1101_p4 = por %p1100_p3, %p1099_p2 }
 0x32a   : > { %p1102_p5 = pnand %p1101_p4, %p1095_p13 }
 0x32c   : > { %1105 = shalt.err (!%p1102_p5)
}
 0x32d   : > { %s1155_s24 = smov 128   ;;  %s1156_s25 = smov 8  }
 0x32e   : > { %1013 = dma.vmem_to_hbm [thread:$0]  (%p1215_p9), %s1319_s20, 512, %s1326_s29, %s824_s10, %s1155_s24, %s1155_s24, %s1156_s25  }
 0x32f PF: > { %s852_s16 = sand.u32 1, %s1132_s6   ;;  %p1016_p6 = pnand %p912_p11, %p1219_p10 }
 0x330   : > { %s853_s17 = scalar_lea.sflag [#allocation4], %s852_s16 }
 0x331   : > { %1127 = dma.done.wait (!%p1016_p6), %s853_s17, 512  }
 0x332   : > { %1129 = vsyncadd (!%p1016_p6), %s853_s17, 4294966784  ;;  %p14_p7 = scmp.ge.s32.totalorder %s1192_s12, 4   ;;  %s1377_s6 = smov %s1136_s7 }
 0x333   : > { %s1378_s7 = smov %s1140_s8  ;;  %s1379_s8 = smov %s1204_s15 }
 0x334   : > { %s1380_s9 = smov %s1192_s12  ;;  %16 = sbr.rel (!%p14_p7) target bundleno = 5 (0x5), region = 76 }
 0x33b   :  { %858 = vsyncpa [#allocation3], 1 }
 0x33c   :  { %860 = vsyncpa [#allocation3 + $0x1], 1 }
 0x33d   :  { %861 = vsyncpa [#allocation4], 1 }
 0x33e   :  { %863 = vsyncpa [#allocation4 + $0x1], 1 }

// kernel: decoder_only_forward.15
= control target key start
LH: loop header
LB: loop body
LE: loop exit
PB: predicated region body
PF: predicated region fallthrough
CT: control target
= control target key end

     0   :  { %11 = vsyncpa [#allocation4], 0  ;;  %s654_s0 = inlined_call_operand.hbm [shape: f32[16,32], index: 0, kind: input, shape index: {}]   ;;  %s655_s1 = inlined_call_operand.hbm [shape: f32[32,32], index: 1, kind: input, shape index: {}]   ;;  %s656_s2 = inlined_call_operand.hbm [shape: f32[1,32], index: 2, kind: input, shape index: {}]   ;;  %s657_s3 = inlined_call_operand.hbm [shape: f32[16,32], index: 3, kind: input, shape index: {}]   ;;  %s658_s4 = inlined_call_operand.hbm [shape: f32[1,32], index: 4, kind: input, shape index: {}]   ;;  %s659_s5 = inlined_call_operand.hbm [shape: f32[1,32], index: 5, kind: input, shape index: {}]   ;;  %s660_s6 = inlined_call_operand.hbm [shape: f32[16,32], index: 6, kind: output, shape index: {}]  }
   0x1   :  { %12 = vsyncpa [#allocation7], 0 }
   0x2   :  { %13 = vsyncpa [#allocation10], 0 }
   0x3   :  { %14 = vsyncpa [#allocation13], 0 }
   0x4   :  { %15 = vsyncpa [#allocation5], 0  ;;  %s494_s21 = smov [#allocation6]   ;;  %s495_s23 = smov [#allocation9]  }
   0x5   :  { %s33_s22 = sshll.u32 %s494_s21, 4  ;;  %s55_s24 = sshll.u32 %s495_s23, 4  ;;  %s34_s22 = int_to_ptr.vmem [resolvable:$true] %s33_s22  ;;  %s539_s24 = int_to_ptr.vmem [resolvable:$true] %s55_s24 }
   0x6   :  { %s330_s27 = scalar_lea.hbm %s655_s1, 512 }
   0x7   :  { %p331_p0 = scmp.ne.s32.totalorder %s655_s1, %s330_s27  ;;  %p334_p1 = scmp.lt.u32.totalorder %s330_s27, %s655_s1 }
   0x9   :  { %p336_p2 = pnand %p334_p1, %p331_p0 }
   0xb   :  { %339 = shalt.err (!%p336_p2)
}
   0xc   :  { %s340_s8 = scalar_lea.vmem %s34_s22, 512  ;;  %p345_p4 = scmp.lt.s32.totalorder %s34_s22, %s34_s22 }
   0xd   :  { %p341_p3 = scmp.ne.s32.totalorder %s34_s22, %s340_s8  ;;  %p346_p5 = scmp.lt.s32.totalorder %s340_s8, %s340_s8 }
   0xf   :  { %p347_p6 = por %p346_p5, %p345_p4 }
  0x11   :  { %p348_p7 = pnand %p347_p6, %p341_p3 }
  0x13   :  { %351 = shalt.err (!%p348_p7)
}
  0x14   :  { %s496_s9 = smov 128   ;;  %s497_s10 = smov 8  }
  0x15   :  { %39 = dma.hbm_to_vmem [thread:$0]  %s655_s1, 512, %s34_s22, [#allocation7], %s496_s9, %s496_s9, %s497_s10  }
  0x16   :  { %s352_s15 = scalar_lea.hbm %s657_s3, 256 }
  0x17   :  { %p353_p8 = scmp.ne.s32.totalorder %s657_s3, %s352_s15  ;;  %p356_p9 = scmp.lt.u32.totalorder %s352_s15, %s657_s3 }
  0x19   :  { %p358_p10 = pnand %p356_p9, %p353_p8 }
  0x1b   :  { %361 = shalt.err (!%p358_p10)
}
  0x1c   :  { %s362_s20 = scalar_lea.vmem %s539_s24, 256  ;;  %p367_p12 = scmp.lt.s32.totalorder %s539_s24, %s539_s24 }
  0x1d   :  { %p363_p11 = scmp.ne.s32.totalorder %s539_s24, %s362_s20  ;;  %p368_p13 = scmp.lt.s32.totalorder %s362_s20, %s362_s20 }
  0x1f   :  { %p369_p0 = por %p368_p13, %p367_p12 }
  0x21   :  { %p370_p1 = pnand %p369_p0, %p363_p11 }
  0x23   :  { %373 = shalt.err (!%p370_p1)
}
  0x24   :  { %61 = dma.hbm_to_vmem [thread:$0]  %s657_s3, 256, %s539_s24, [#allocation10], %s496_s9, %s496_s9, %s497_s10  }
  0x25   :  { %s498_s22 = smov [#allocation3]   ;;  %s499_s25 = smov [#allocation8]  }
  0x26   :  { %s21_s23 = sshll.u32 %s498_s22, 4  ;;  %s46_s26 = sshll.u32 %s499_s25, 4  ;;  %s22_s23 = int_to_ptr.vmem [resolvable:$true] %s21_s23  ;;  %s47_s26 = int_to_ptr.vmem [resolvable:$true] %s46_s26 }
  0x27   :  { %s374_s29 = scalar_lea.hbm %s654_s0, 256 }
  0x28   :  { %p375_p2 = scmp.ne.s32.totalorder %s654_s0, %s374_s29  ;;  %p378_p3 = scmp.lt.u32.totalorder %s374_s29, %s654_s0 }
  0x2a   :  { %p380_p4 = pnand %p378_p3, %p375_p2 }
  0x2c   :  { %383 = shalt.err (!%p380_p4)
}
  0x2d   :  { %s384_s3 = scalar_lea.vmem %s22_s23, 256  ;;  %p389_p6 = scmp.lt.s32.totalorder %s22_s23, %s22_s23 }
  0x2e   :  { %p385_p5 = scmp.ne.s32.totalorder %s22_s23, %s384_s3  ;;  %p390_p7 = scmp.lt.s32.totalorder %s384_s3, %s384_s3 }
  0x30   :  { %p391_p8 = por %p390_p7, %p389_p6 }
  0x32   :  { %p392_p9 = pnand %p391_p8, %p385_p5 }
  0x34   :  { %395 = shalt.err (!%p392_p9)
}
  0x35   :  { %27 = dma.hbm_to_vmem [thread:$0]  %s654_s0, 256, %s22_s23, [#allocation4], %s496_s9, %s496_s9, %s497_s10  }
  0x36   :  { %s396_s15 = scalar_lea.hbm %s656_s2, 16 }
  0x37   :  { %p397_p10 = scmp.ne.s32.totalorder %s656_s2, %s396_s15  ;;  %p400_p11 = scmp.lt.u32.totalorder %s396_s15, %s656_s2 }
  0x39   :  { %p402_p12 = pnand %p400_p11, %p397_p10 }
  0x3b   :  { %405 = shalt.err (!%p402_p12)
}
  0x3c   :  { %s406_s20 = scalar_lea.vmem %s47_s26, 16  ;;  %s410_s1 = scalar_lea.vmem %s47_s26, 32 }
  0x3d   :  { %p407_p13 = scmp.ne.s32.totalorder %s47_s26, %s406_s20  ;;  %p411_p0 = scmp.lt.s32.totalorder %s47_s26, %s47_s26 }
  0x3e   :  { %p412_p1 = scmp.lt.s32.totalorder %s410_s1, %s406_s20 }
  0x40   :  { %p413_p2 = por %p412_p1, %p411_p0 }
  0x42   :  { %p414_p3 = pnand %p413_p2, %p407_p13 }
  0x44   :  { %417 = shalt.err (!%p414_p3)
}
  0x45   :  { %49 = dma.hbm_to_vmem [thread:$0]  %s656_s2, 16, %s47_s26, [#allocation7]  }
  0x46   :  { %s500_s22 = smov [#allocation11]   ;;  %s501_s25 = smov [#allocation12]  }
  0x47   :  { %s68_s23 = sshll.u32 %s500_s22, 4  ;;  %s78_s27 = sshll.u32 %s501_s25, 4  ;;  %s69_s23 = int_to_ptr.vmem [resolvable:$true] %s68_s23  ;;  %s79_s27 = int_to_ptr.vmem [resolvable:$true] %s78_s27 }
  0x48   :  { %s418_s30 = scalar_lea.hbm %s658_s4, 16 }
  0x49   :  { %p419_p4 = scmp.ne.s32.totalorder %s658_s4, %s418_s30  ;;  %p422_p5 = scmp.lt.u32.totalorder %s418_s30, %s658_s4 }
  0x4b   :  { %p424_p6 = pnand %p422_p5, %p419_p4 }
  0x4d   :  { %427 = shalt.err (!%p424_p6)
}
  0x4e   :  { %s428_s2 = scalar_lea.vmem %s69_s23, 16  ;;  %s432_s26 = scalar_lea.vmem %s69_s23, 32 }
  0x4f   :  { %p429_p7 = scmp.ne.s32.totalorder %s69_s23, %s428_s2  ;;  %p433_p8 = scmp.lt.s32.totalorder %s69_s23, %s69_s23 }
  0x50   :  { %p434_p9 = scmp.lt.s32.totalorder %s432_s26, %s428_s2 }
  0x52   :  { %p435_p10 = por %p434_p9, %p433_p8 }
  0x54   :  { %p436_p11 = pnand %p435_p10, %p429_p7 }
  0x56   :  { %439 = shalt.err (!%p436_p11)
}
  0x57   :  { %71 = dma.hbm_to_vmem [thread:$0]  %s658_s4, 16, %s69_s23, [#allocation10]  }
  0x58   :  { %s440_s15 = scalar_lea.hbm %s659_s5, 16 }
  0x59   :  { %p441_p12 = scmp.ne.s32.totalorder %s659_s5, %s440_s15  ;;  %p444_p13 = scmp.lt.u32.totalorder %s440_s15, %s659_s5 }
  0x5b   :  { %p446_p0 = pnand %p444_p13, %p441_p12 }
  0x5d   :  { %449 = shalt.err (!%p446_p0)
}
  0x5e   :  { %s450_s20 = scalar_lea.vmem %s79_s27, 16  ;;  %s454_s1 = scalar_lea.vmem %s79_s27, 32 }
  0x5f   :  { %p451_p1 = scmp.ne.s32.totalorder %s79_s27, %s450_s20  ;;  %p455_p2 = scmp.lt.s32.totalorder %s79_s27, %s79_s27 }
  0x60   :  { %p456_p3 = scmp.lt.s32.totalorder %s454_s1, %s450_s20 }
  0x62   :  { %p457_p4 = por %p456_p3, %p455_p2 }
  0x64   :  { %p458_p5 = pnand %p457_p4, %p451_p1 }
  0x66   :  { %461 = shalt.err (!%p458_p5)
}
  0x67   :  { %81 = dma.hbm_to_vmem [thread:$0]  %s659_s5, 16, %s79_s27, [#allocation13]  }
  0x68   :  { %484 = dma.done.wait [#allocation4], 256  }
  0x69   :  { %485 = vsyncadd [#allocation4], 4294967040 }
  0x6a   :  { %486 = dma.done.wait [#allocation7], 528  }
  0x6b   :  { %487 = vsyncadd [#allocation7], 4294966768 }
  0x6c   :  { %488 = dma.done.wait [#allocation10], 272  }
  0x6d   :  { %489 = vsyncadd [#allocation10], 4294967024 }
  0x6e   :  { %490 = dma.done.wait [#allocation13], 16  }
  0x6f   :  { %491 = vsyncadd [#allocation13], 4294967280  ;;  %vm104_vm0 = vcmask 261120   ;;  %v502_v0 = vmov 0.0   ;;  %v111_v1 = vld [vmem:[#allocation6] sm:$0xff]  ;;  %v112_v2 = vld [vmem:[#allocation6 + $0x8] sm:$0xff] }
  0x70   :  { %106 = vst.msk [vmem:[#allocation2 + $0x8] sm:$0xff] %vm104_vm0, %v502_v0  ;;  %105 = vst.msk [vmem:[#allocation2] sm:$0xff] %vm104_vm0, %v502_v0  ;;  %v113_v3 = vld [vmem:[#allocation6 + $0x10] sm:$0xff]  ;;  %v308_v4 = vpack.c.bf16 %v112_v2, %v111_v1  ;;  %v114_v5 = vld [vmem:[#allocation6 + $0x18] sm:$0xff]  ;;  %s503_s5 = smov [#allocation14]  }
  0x71   :  { %v109_v6 = vld [vmem:[#allocation3] sm:$0xff]  ;;  %v312_v7 = vpack.c.bf16 %v114_v5, %v113_v3  ;;  %v110_v8 = vld [vmem:[#allocation3 + $0x8] sm:$0xff]  ;;  %v288_v15 = vld [vmem:[#allocation8] ss:$0 sm:$0xff]  ;;  %s271_s21 = sshll.u32 %s503_s5, 4  ;;  %s272_s21 = int_to_ptr.vmem [resolvable:$true] %s271_s21 }
  0x72   :  { %305 = vmatprep.mubr.msk.f32.mxu0 %vm104_vm0, %v109_v6  ;;  %309 = vmatprep.subr.bf16.mxu0 %v308_v4  ;;  %v289_v39 = vld [vmem:[#allocation11] ss:$0 sm:$0xff]  ;;  %v242_v41 = vld [vmem:[#allocation9] sm:$0xff]  ;;  %v290_v44 = vld [vmem:[#allocation12] ss:$0 sm:$0xff]  ;;  %s462_s22 = scalar_lea.vmem %s272_s21, 256  ;;  %p467_p7 = scmp.lt.s32.totalorder %s272_s21, %s272_s21 }
  0x73   :  { %311 = vmatpush3.bf16.msra.mxu0 %v308_v4  ;;  %v243_v47 = vld [vmem:[#allocation9 + $0x8] sm:$0xff]  ;;  %p463_p6 = scmp.ne.s32.totalorder %s272_s21, %s462_s22  ;;  %p468_p8 = scmp.lt.s32.totalorder %s462_s22, %s462_s22 }
  0x74   :  { %313 = vmatprep.subr.bf16.mxu0 %v312_v7 }
  0x75   :  { %p469_p9 = por %p468_p8, %p467_p7 }
  0x77   :  { %315 = vmatpush3.bf16.msra.mxu0 %v312_v7  ;;  %v108_v9 = vld [vmem:[#allocation2 + $0x8] sm:$0xff]  ;;  %v107_v10 = vld [vmem:[#allocation2] sm:$0xff]  ;;  %p470_p10 = pnand %p469_p9, %p463_p6 }
  0x7a   :  { %306 = vmatmul.mubr.msk.f32.vlgmr.msra.gmra.mrb[0].mxu0 %vm104_vm0, %v110_v8 }
 0x14d   :  { %v307_v11 = vpop.f32.mrb[0].mxu0 }
 0x14e   :  { %v198_v12 = vadd.f32 %v307_v11, %v108_v9  ;;  %v188_v13 = vpop.f32.mrb[1].mxu0 }
 0x14f   :  { %v197_v14 = vadd.f32 %v188_v13, %v107_v10 }
 0x150   :  { %200 = vst.msk [vmem:[#allocation2 + $0x8] sm:$0xff] %vm104_vm0, %v198_v12 }
 0x151   :  { %199 = vst.msk [vmem:[#allocation2] sm:$0xff] %vm104_vm0, %v197_v14 }
 0x157   :  { %v205_v17 = vld [vmem:[#allocation2 + $0x8] sm:$0xff] }
 0x158   :  { %v204_v16 = vld [vmem:[#allocation2] sm:$0xff]  ;;  %v214_v20 = vadd.f32 %v288_v15, %v205_v17 }
 0x159   :  { %v213_v18 = vadd.f32 %v288_v15, %v204_v16 }
 0x15a   :  { %v218_v21 = vsel %vm104_vm0, %v214_v20, 0.0 }
 0x15b   :  { %v215_v19 = vsel %vm104_vm0, %v213_v18, 0.0 }
 0x15c   :  { %216 = vadd.xlane.f32.xlu0 %v215_v19 }
 0x160   :  { %219 = vadd.xlane.f32.xlu0 %v218_v21 }
 0x1e9   :  { %v217_v22 = vpop.xlane.xlu0 %216 }
 0x1ea   :  { %v222_v23 = vmul.f32 0.03125, %v217_v22 }
 0x1ec   :  { %v224_v24 = vsub.f32 %v213_v18, %v222_v23 }
 0x1ed   :  { %v220_v25 = vpop.xlane.xlu0 %219 }
 0x1ee   :  { %v223_v26 = vmul.f32 0.03125, %v220_v25  ;;  %v226_v27 = vmul.f32 %v224_v24, %v224_v24 }
 0x1f0   :  { %v225_v28 = vsub.f32 %v214_v20, %v223_v26  ;;  %v228_v29 = vsel %vm104_vm0, %v226_v27, 0.0 }
 0x1f1   :  { %229 = vadd.xlane.f32.xlu1 %v228_v29 }
 0x1f2   :  { %v227_v30 = vmul.f32 %v225_v28, %v225_v28 }
 0x1f4   :  { %v231_v31 = vsel %vm104_vm0, %v227_v30, 0.0 }
 0x1f5   :  { %232 = vadd.xlane.f32.xlu1 %v231_v31 }
 0x27e   :  { %v230_v32 = vpop.xlane.xlu1 %229 }
 0x27f   :  { %v234_v33 = vmul.f32 0.03125, %v230_v32 }
 0x281   :  { %v236_v34 = vadd.f32 1e-05, %v234_v33 }
 0x282   :  { %v233_v35 = vpop.xlane.xlu1 %232 }
 0x283   :  { %326 = vrsqrt.f32 %v236_v34  ;;  %v235_v36 = vmul.f32 0.03125, %v233_v35 }
 0x285   :  { %v237_v37 = vadd.f32 1e-05, %v235_v36 }
 0x287   :  { %328 = vrsqrt.f32 %v237_v37 }
 0x28d   :  { %v327_v38 = vpop.eup %326 }
 0x28e   :  { %v240_v40 = vmul.f32 %v327_v38, %v224_v24 }
 0x290   :  { %v251_v42 = vmul.f32 %v289_v39, %v240_v40 }
 0x291   :  { %v329_v43 = vpop.eup %328 }
 0x292   :  { %v241_v45 = vmul.f32 %v329_v43, %v225_v28  ;;  %v253_v46 = vadd.f32 %v251_v42, %v242_v41 }
 0x294   :  { %v252_v48 = vmul.f32 %v289_v39, %v241_v45  ;;  %v262_v49 = vadd.f32 %v290_v44, %v253_v46 }
 0x296   :  { %v254_v50 = vadd.f32 %v252_v48, %v243_v47  ;;  %264 = vst.msk [vmem:[#allocation14] sm:$0xff] %vm104_vm0, %v262_v49 }
 0x298   :  { %v263_v51 = vadd.f32 %v290_v44, %v254_v50 }
 0x29a   :  { %265 = vst.msk [vmem:[#allocation14 + $0x8] sm:$0xff] %vm104_vm0, %v263_v51 }
 0x29b   :  { %473 = shalt.err (!%p470_p10)
}
 0x29c   :  { %s474_s27 = scalar_lea.hbm %s660_s6, 256 }
 0x29d   :  { %p475_p11 = scmp.ne.s32.totalorder %s660_s6, %s474_s27  ;;  %p478_p12 = scmp.lt.u32.totalorder %s474_s27, %s660_s6 }
 0x29f   :  { %p480_p13 = pnand %p478_p12, %p475_p11 }
 0x2a1   :  { %483 = shalt.err (!%p480_p13)
}
 0x2a2   :  { %277 = dma.vmem_to_hbm [thread:$0]  %s272_s21, 256, %s660_s6, [#allocation5], %s496_s9, %s496_s9, %s497_s10  }
 0x2a3   :  { %492 = dma.done.wait [#allocation5], 256  }
 0x2a4   :  { %493 = vsyncadd [#allocation5], 4294967040 }
 0x2a5   :  { %281 = vsyncpa [#allocation4], 1 }
 0x2a6   :  { %282 = vsyncpa [#allocation7], 1 }
 0x2a7   :  { %283 = vsyncpa [#allocation10], 1 }
 0x2a8   :  { %284 = vsyncpa [#allocation13], 1 }
 0x2a9   :  { %285 = vsyncpa [#allocation5], 1 }

// kernel: decoder_only_forward.16
= control target key start
LH: loop header
LB: loop body
LE: loop exit
PB: predicated region body
PF: predicated region fallthrough
CT: control target
= control target key end

     0   :  { %8 = vsyncpa [#allocation4], 0  ;;  %s472_s0 = inlined_call_operand.hbm [shape: f32[16,32], index: 0, kind: input, shape index: {}]   ;;  %s473_s1 = inlined_call_operand.hbm [shape: f32[32,128], index: 1, kind: input, shape index: {}]   ;;  %s474_s2 = inlined_call_operand.hbm [shape: f32[1,128], index: 2, kind: input, shape index: {}]   ;;  %s475_s3 = inlined_call_operand.hbm [shape: f32[16,128], index: 3, kind: output, shape index: {}]  }
   0x1   :  { %9 = vsyncpa [#allocation7], 0 }
   0x2   :  { %10 = vsyncpa [#allocation5], 0  ;;  %s382_s12 = smov [#allocation6]   ;;  %s383_s14 = smov [#allocation3]  }
   0x3   :  { %s28_s13 = sshll.u32 %s382_s12, 4  ;;  %s16_s15 = sshll.u32 %s383_s14, 4  ;;  %s29_s13 = int_to_ptr.vmem [resolvable:$true] %s28_s13  ;;  %s408_s15 = int_to_ptr.vmem [resolvable:$true] %s16_s15 }
   0x4   :  { %s288_s18 = scalar_lea.hbm %s473_s1, 512 }
   0x5   :  { %p289_p0 = scmp.ne.s32.totalorder %s473_s1, %s288_s18  ;;  %p292_p1 = scmp.lt.u32.totalorder %s288_s18, %s473_s1 }
   0x7   :  { %p294_p2 = pnand %p292_p1, %p289_p0 }
   0x9   :  { %297 = shalt.err (!%p294_p2)
}
   0xa   :  { %s298_s23 = scalar_lea.vmem %s29_s13, 512  ;;  %p303_p4 = scmp.lt.s32.totalorder %s29_s13, %s29_s13 }
   0xb   :  { %p299_p3 = scmp.ne.s32.totalorder %s29_s13, %s298_s23  ;;  %p304_p5 = scmp.lt.s32.totalorder %s298_s23, %s298_s23 }
   0xd   :  { %p305_p6 = por %p304_p5, %p303_p4 }
   0xf   :  { %p306_p7 = pnand %p305_p6, %p299_p3 }
  0x11   :  { %309 = shalt.err (!%p306_p7)
}
  0x12   :  { %s384_s24 = smov 128   ;;  %s385_s25 = smov 8  }
  0x13   :  { %34 = dma.hbm_to_vmem [thread:$0]  %s473_s1, 512, %s29_s13, [#allocation7], %s384_s24, %s384_s24, %s385_s25  }
  0x14   :  { %s310_s30 = scalar_lea.hbm %s472_s0, 256 }
  0x15   :  { %p311_p8 = scmp.ne.s32.totalorder %s472_s0, %s310_s30  ;;  %p314_p9 = scmp.lt.u32.totalorder %s310_s30, %s472_s0 }
  0x17   :  { %p316_p10 = pnand %p314_p9, %p311_p8 }
  0x19   :  { %319 = shalt.err (!%p316_p10)
}
  0x1a   :  { %s320_s8 = scalar_lea.vmem %s408_s15, 256  ;;  %p325_p12 = scmp.lt.s32.totalorder %s408_s15, %s408_s15 }
  0x1b   :  { %p321_p11 = scmp.ne.s32.totalorder %s408_s15, %s320_s8  ;;  %p326_p13 = scmp.lt.s32.totalorder %s320_s8, %s320_s8 }
  0x1d   :  { %p327_p0 = por %p326_p13, %p325_p12 }
  0x1f   :  { %p328_p1 = pnand %p327_p0, %p321_p11 }
  0x21   :  { %331 = shalt.err (!%p328_p1)
}
  0x22   :  { %22 = dma.hbm_to_vmem [thread:$0]  %s472_s0, 256, %s408_s15, [#allocation4], %s384_s24, %s384_s24, %s385_s25  }
  0x23   :  { %s386_s10 = smov [#allocation8]   ;;  %s332_s14 = scalar_lea.hbm %s474_s2, 16 }
  0x24   :  { %s41_s11 = sshll.u32 %s386_s10, 4  ;;  %p333_p2 = scmp.ne.s32.totalorder %s474_s2, %s332_s14  ;;  %s42_s11 = int_to_ptr.vmem [resolvable:$true] %s41_s11 }
  0x25   :  { %p336_p3 = scmp.lt.u32.totalorder %s332_s14, %s474_s2 }
  0x27   :  { %p338_p4 = pnand %p336_p3, %p333_p2 }
  0x29   :  { %341 = shalt.err (!%p338_p4)
}
  0x2a   :  { %s342_s20 = scalar_lea.vmem %s42_s11, 16  ;;  %s346_s0 = scalar_lea.vmem %s42_s11, 32 }
  0x2b   :  { %p343_p5 = scmp.ne.s32.totalorder %s42_s11, %s342_s20  ;;  %p347_p6 = scmp.lt.s32.totalorder %s42_s11, %s42_s11 }
  0x2c   :  { %p348_p7 = scmp.lt.s32.totalorder %s346_s0, %s342_s20 }
  0x2e   :  { %p349_p8 = por %p348_p7, %p347_p6 }
  0x30   :  { %p350_p9 = pnand %p349_p8, %p343_p5 }
  0x32   :  { %353 = shalt.err (!%p350_p9)
}
  0x33   :  { %44 = dma.hbm_to_vmem [thread:$0]  %s474_s2, 16, %s42_s11, [#allocation7]  }
  0x34   :  { %376 = dma.done.wait [#allocation4], 256  }
  0x35   :  { %377 = vsyncadd [#allocation4], 4294967040 }
  0x36   :  { %378 = dma.done.wait [#allocation7], 528  }
  0x37   :  { %379 = vsyncadd [#allocation7], 4294966768  ;;  %vm68_vm0 = vcmask 261120   ;;  %v64_v0 = vld [vmem:[#allocation6] sm:$0xff]  ;;  %v65_v1 = vld [vmem:[#allocation6 + $0x8] sm:$0xff]  ;;  %s387_s2 = smov [#allocation9]  }
  0x38   :  { %v66_v2 = vld [vmem:[#allocation6 + $0x10] sm:$0xff]  ;;  %v270_v3 = vpack.c.bf16 %v65_v1, %v64_v0  ;;  %v67_v4 = vld [vmem:[#allocation6 + $0x18] sm:$0xff]  ;;  %v250_v8 = vld [vmem:[#allocation8] ss:$0 sm:$0xff]  ;;  %s235_s22 = sshll.u32 %s387_s2, 4  ;;  %s236_s22 = int_to_ptr.vmem [resolvable:$true] %s235_s22 }
  0x39   :  { %v62_v5 = vld [vmem:[#allocation3] sm:$0xff]  ;;  %v274_v6 = vpack.c.bf16 %v67_v4, %v66_v2  ;;  %v63_v7 = vld [vmem:[#allocation3 + $0x8] sm:$0xff]  ;;  %s354_s23 = scalar_lea.vmem %s236_s22, 256  ;;  %p359_p11 = scmp.lt.s32.totalorder %s236_s22, %s236_s22 }
  0x3a   :  { %267 = vmatprep.mubr.msk.f32.mxu0 %vm68_vm0, %v62_v5  ;;  %271 = vmatprep.subr.bf16.mxu0 %v270_v3  ;;  %p355_p10 = scmp.ne.s32.totalorder %s236_s22, %s354_s23  ;;  %p360_p12 = scmp.lt.s32.totalorder %s354_s23, %s354_s23 }
  0x3b   :  { %273 = vmatpush3.bf16.msra.mxu0 %v270_v3 }
  0x3c   :  { %275 = vmatprep.subr.bf16.mxu0 %v274_v6  ;;  %p361_p13 = por %p360_p12, %p359_p11 }
  0x3e   :  { %p362_p0 = pnand %p361_p13, %p355_p10 }
  0x3f   :  { %277 = vmatpush3.bf16.msra.mxu0 %v274_v6 }
  0x42   :  { %268 = vmatmul.mubr.msk.f32.vlgmr.msra.gmra.mrb[0].mxu0 %vm68_vm0, %v63_v7 }
 0x115   :  { %v269_v9 = vpop.f32.mrb[0].mxu0 }
 0x116   :  { %v167_v10 = vadd.f32 %v269_v9, %v250_v8  ;;  %v141_v11 = vpop.f32.mrb[1].mxu0 }
 0x117   :  { %v166_v12 = vadd.f32 %v250_v8, %v141_v11 }
 0x118   :  { %v171_v13 = vmul.f32 0.70710677, %v167_v10  ;;  %v169_v1 = vmul.f32 0.5, %v167_v10 }
 0x119   :  { %v170_v14 = vmul.f32 0.70710677, %v166_v12  ;;  %v168_v3 = vmul.f32 0.5, %v166_v12 }
 0x11a   :  { %v252_v15 = vclamps-f32 %v171_v13, 4.0 }
 0x11b   :  { %v251_v16 = vclamps-f32 %v170_v14, 4.0 }
 0x11c   :  { %v177_v17 = vmul.f32 %v252_v15, %v252_v15 }
 0x11d   :  { %v176_v18 = vmul.f32 %v251_v16, %v251_v16 }
 0x11e   :  { %v179_v19 = vmul.f32 -2.7261424e-10, %v177_v17  ;;  %v203_v20 = vmul.f32 -1.45660715e-05, %v177_v17 }
 0x11f   :  { %v178_v21 = vmul.f32 -2.7261424e-10, %v176_v18  ;;  %v202_v22 = vmul.f32 -1.45660715e-05, %v176_v18 }
 0x120   :  { %v181_v23 = vadd.f32 2.7706815e-08, %v179_v19  ;;  %v205_v24 = vadd.f32 -0.00021337405, %v203_v20 }
 0x121   :  { %v180_v25 = vadd.f32 2.7706815e-08, %v178_v21  ;;  %v204_v26 = vadd.f32 -0.00021337405, %v202_v22 }
 0x122   :  { %v183_v27 = vmul.f32 %v181_v23, %v177_v17  ;;  %v207_v28 = vmul.f32 %v205_v24, %v177_v17 }
 0x123   :  { %v182_v29 = vmul.f32 %v180_v25, %v176_v18  ;;  %v206_v30 = vmul.f32 %v204_v26, %v176_v18 }
 0x124   :  { %v185_v31 = vadd.f32 -2.101024e-06, %v183_v27  ;;  %v209_v32 = vadd.f32 -0.001682827, %v207_v28 }
 0x125   :  { %v184_v33 = vadd.f32 -2.101024e-06, %v182_v29  ;;  %v208_v34 = vadd.f32 -0.001682827, %v206_v30 }
 0x126   :  { %v187_v35 = vmul.f32 %v185_v31, %v177_v17  ;;  %v211_v36 = vmul.f32 %v209_v32, %v177_v17 }
 0x127   :  { %v186_v37 = vmul.f32 %v184_v33, %v176_v18  ;;  %v210_v38 = vmul.f32 %v208_v34, %v176_v18 }
 0x128   :  { %v189_v39 = vadd.f32 -5.6925062e-05, %v187_v35  ;;  %v213_v40 = vadd.f32 -0.0073733293, %v211_v36 }
 0x129   :  { %v188_v41 = vadd.f32 -5.6925062e-05, %v186_v37  ;;  %v212_v42 = vadd.f32 -0.0073733293, %v210_v38 }
 0x12a   :  { %v191_v43 = vmul.f32 %v189_v39, %v177_v17  ;;  %v215_v44 = vmul.f32 %v213_v40, %v177_v17 }
 0x12b   :  { %v190_v45 = vmul.f32 %v188_v41, %v176_v18  ;;  %v214_v46 = vmul.f32 %v212_v42, %v176_v18 }
 0x12c   :  { %v193_v47 = vadd.f32 -0.00073499064, %v191_v43  ;;  %v217_v48 = vadd.f32 -0.014264739, %v215_v44 }
 0x12d   :  { %v192_v49 = vadd.f32 -0.00073499064, %v190_v45  ;;  %v216_v50 = vadd.f32 -0.014264739, %v214_v46 }
 0x12e   :  { %v195_v51 = vmul.f32 %v193_v47, %v177_v17  ;;  %284 = vrcp.f32 %v217_v48 }
 0x12f   :  { %v194_v52 = vmul.f32 %v192_v49, %v176_v18  ;;  %286 = vrcp.f32 %v216_v50 }
 0x130   :  { %v197_v53 = vadd.f32 -0.0029546, %v195_v51 }
 0x131   :  { %v196_v54 = vadd.f32 -0.0029546, %v194_v52 }
 0x132   :  { %v199_v55 = vmul.f32 %v197_v53, %v177_v17 }
 0x133   :  { %v198_v56 = vmul.f32 %v196_v54, %v176_v18 }
 0x134   :  { %v201_v57 = vadd.f32 -0.016096033, %v199_v55 }
 0x135   :  { %v200_v58 = vadd.f32 -0.016096033, %v198_v56 }
 0x136   :  { %v219_v59 = vmul.f32 %v252_v15, %v201_v57 }
 0x137   :  { %v218_v60 = vmul.f32 %v251_v16, %v200_v58 }
 0x138   :  { %v285_v61 = vpop.eup %284 }
 0x139   :  { %v287_v62 = vpop.eup %286  ;;  %v223_v63 = vmul.f32 %v285_v61, %v219_v59 }
 0x13a   :  { %v221_v0 = vmul.f32 %v287_v62, %v218_v60 }
 0x13b   :  { %v225_v2 = vadd.f32 1.0, %v223_v63 }
 0x13c   :  { %v224_v4 = vadd.f32 1.0, %v221_v0 }
 0x13d   :  { %v227_v5 = vmul.f32 %v225_v2, %v169_v1 }
 0x13e   :  { %v226_v6 = vmul.f32 %v224_v4, %v168_v3 }
 0x13f   :  { %229 = vst [vmem:[#allocation9 + $0x8] sm:$0xff] %v227_v5 }
 0x140   :  { %228 = vst [vmem:[#allocation9] sm:$0xff] %v226_v6 }
 0x141   :  { %365 = shalt.err (!%p362_p0)
}
 0x142   :  { %s366_s28 = scalar_lea.hbm %s475_s3, 256 }
 0x143   :  { %p367_p1 = scmp.ne.s32.totalorder %s475_s3, %s366_s28  ;;  %p370_p2 = scmp.lt.u32.totalorder %s366_s28, %s475_s3 }
 0x145   :  { %p372_p3 = pnand %p370_p2, %p367_p1 }
 0x147   :  { %375 = shalt.err (!%p372_p3)
}
 0x148   :  { %241 = dma.vmem_to_hbm [thread:$0]  %s236_s22, 256, %s475_s3, [#allocation5], %s384_s24, %s384_s24, %s385_s25  }
 0x149   :  { %380 = dma.done.wait [#allocation5], 256  }
 0x14a   :  { %381 = vsyncadd [#allocation5], 4294967040 }
 0x14b   :  { %245 = vsyncpa [#allocation4], 1 }
 0x14c   :  { %246 = vsyncpa [#allocation7], 1 }
 0x14d   :  { %247 = vsyncpa [#allocation5], 1 }

// kernel: decoder_only_forward.23
= control target key start
LH: loop header
LB: loop body
LE: loop exit
PB: predicated region body
PF: predicated region fallthrough
CT: control target
= control target key end

     0   :  { %8 = vsyncpa [#allocation4], 0  ;;  %s406_s0 = inlined_call_operand.hbm [shape: f32[16,32], index: 0, kind: input, shape index: {}]   ;;  %s407_s1 = inlined_call_operand.hbm [shape: f32[32,128], index: 1, kind: input, shape index: {}]   ;;  %s408_s2 = inlined_call_operand.hbm [shape: f32[1,128], index: 2, kind: input, shape index: {}]   ;;  %s409_s3 = inlined_call_operand.hbm [shape: f32[16,128], index: 3, kind: output, shape index: {}]  }
   0x1   :  { %9 = vsyncpa [#allocation7], 0 }
   0x2   :  { %10 = vsyncpa [#allocation5], 0  ;;  %s316_s12 = smov [#allocation6]   ;;  %s317_s14 = smov [#allocation3]  }
   0x3   :  { %s28_s13 = sshll.u32 %s316_s12, 4  ;;  %s16_s15 = sshll.u32 %s317_s14, 4  ;;  %s29_s13 = int_to_ptr.vmem [resolvable:$true] %s28_s13  ;;  %s342_s15 = int_to_ptr.vmem [resolvable:$true] %s16_s15 }
   0x4   :  { %s222_s18 = scalar_lea.hbm %s407_s1, 512 }
   0x5   :  { %p223_p0 = scmp.ne.s32.totalorder %s407_s1, %s222_s18  ;;  %p226_p1 = scmp.lt.u32.totalorder %s222_s18, %s407_s1 }
   0x7   :  { %p228_p2 = pnand %p226_p1, %p223_p0 }
   0x9   :  { %231 = shalt.err (!%p228_p2)
}
   0xa   :  { %s232_s23 = scalar_lea.vmem %s29_s13, 512  ;;  %p237_p4 = scmp.lt.s32.totalorder %s29_s13, %s29_s13 }
   0xb   :  { %p233_p3 = scmp.ne.s32.totalorder %s29_s13, %s232_s23  ;;  %p238_p5 = scmp.lt.s32.totalorder %s232_s23, %s232_s23 }
   0xd   :  { %p239_p6 = por %p238_p5, %p237_p4 }
   0xf   :  { %p240_p7 = pnand %p239_p6, %p233_p3 }
  0x11   :  { %243 = shalt.err (!%p240_p7)
}
  0x12   :  { %s318_s24 = smov 128   ;;  %s319_s25 = smov 8  }
  0x13   :  { %34 = dma.hbm_to_vmem [thread:$0]  %s407_s1, 512, %s29_s13, [#allocation7], %s318_s24, %s318_s24, %s319_s25  }
  0x14   :  { %s244_s30 = scalar_lea.hbm %s406_s0, 256 }
  0x15   :  { %p245_p8 = scmp.ne.s32.totalorder %s406_s0, %s244_s30  ;;  %p248_p9 = scmp.lt.u32.totalorder %s244_s30, %s406_s0 }
  0x17   :  { %p250_p10 = pnand %p248_p9, %p245_p8 }
  0x19   :  { %253 = shalt.err (!%p250_p10)
}
  0x1a   :  { %s254_s8 = scalar_lea.vmem %s342_s15, 256  ;;  %p259_p12 = scmp.lt.s32.totalorder %s342_s15, %s342_s15 }
  0x1b   :  { %p255_p11 = scmp.ne.s32.totalorder %s342_s15, %s254_s8  ;;  %p260_p13 = scmp.lt.s32.totalorder %s254_s8, %s254_s8 }
  0x1d   :  { %p261_p0 = por %p260_p13, %p259_p12 }
  0x1f   :  { %p262_p1 = pnand %p261_p0, %p255_p11 }
  0x21   :  { %265 = shalt.err (!%p262_p1)
}
  0x22   :  { %22 = dma.hbm_to_vmem [thread:$0]  %s406_s0, 256, %s342_s15, [#allocation4], %s318_s24, %s318_s24, %s319_s25  }
  0x23   :  { %s320_s10 = smov [#allocation8]   ;;  %s266_s14 = scalar_lea.hbm %s408_s2, 16 }
  0x24   :  { %s41_s11 = sshll.u32 %s320_s10, 4  ;;  %p267_p2 = scmp.ne.s32.totalorder %s408_s2, %s266_s14  ;;  %s42_s11 = int_to_ptr.vmem [resolvable:$true] %s41_s11 }
  0x25   :  { %p270_p3 = scmp.lt.u32.totalorder %s266_s14, %s408_s2 }
  0x27   :  { %p272_p4 = pnand %p270_p3, %p267_p2 }
  0x29   :  { %275 = shalt.err (!%p272_p4)
}
  0x2a   :  { %s276_s20 = scalar_lea.vmem %s42_s11, 16  ;;  %s280_s0 = scalar_lea.vmem %s42_s11, 32 }
  0x2b   :  { %p277_p5 = scmp.ne.s32.totalorder %s42_s11, %s276_s20  ;;  %p281_p6 = scmp.lt.s32.totalorder %s42_s11, %s42_s11 }
  0x2c   :  { %p282_p7 = scmp.lt.s32.totalorder %s280_s0, %s276_s20 }
  0x2e   :  { %p283_p8 = por %p282_p7, %p281_p6 }
  0x30   :  { %p284_p9 = pnand %p283_p8, %p277_p5 }
  0x32   :  { %287 = shalt.err (!%p284_p9)
}
  0x33   :  { %44 = dma.hbm_to_vmem [thread:$0]  %s408_s2, 16, %s42_s11, [#allocation7]  }
  0x34   :  { %310 = dma.done.wait [#allocation4], 256  }
  0x35   :  { %311 = vsyncadd [#allocation4], 4294967040 }
  0x36   :  { %312 = dma.done.wait [#allocation7], 528  }
  0x37   :  { %313 = vsyncadd [#allocation7], 4294966768  ;;  %vm68_vm0 = vcmask 261120   ;;  %v64_v0 = vld [vmem:[#allocation6] sm:$0xff]  ;;  %v65_v1 = vld [vmem:[#allocation6 + $0x8] sm:$0xff]  ;;  %s321_s2 = smov [#allocation9]  }
  0x38   :  { %v66_v2 = vld [vmem:[#allocation6 + $0x10] sm:$0xff]  ;;  %v208_v3 = vpack.c.bf16 %v65_v1, %v64_v0  ;;  %v67_v4 = vld [vmem:[#allocation6 + $0x18] sm:$0xff]  ;;  %v190_v8 = vld [vmem:[#allocation8] ss:$0 sm:$0xff]  ;;  %s175_s22 = sshll.u32 %s321_s2, 4  ;;  %s176_s22 = int_to_ptr.vmem [resolvable:$true] %s175_s22 }
  0x39   :  { %v62_v5 = vld [vmem:[#allocation3] sm:$0xff]  ;;  %v212_v6 = vpack.c.bf16 %v67_v4, %v66_v2  ;;  %v63_v7 = vld [vmem:[#allocation3 + $0x8] sm:$0xff]  ;;  %s288_s23 = scalar_lea.vmem %s176_s22, 256  ;;  %p293_p11 = scmp.lt.s32.totalorder %s176_s22, %s176_s22 }
  0x3a   :  { %205 = vmatprep.mubr.msk.f32.mxu0 %vm68_vm0, %v62_v5  ;;  %209 = vmatprep.subr.bf16.mxu0 %v208_v3  ;;  %p289_p10 = scmp.ne.s32.totalorder %s176_s22, %s288_s23  ;;  %p294_p12 = scmp.lt.s32.totalorder %s288_s23, %s288_s23 }
  0x3b   :  { %211 = vmatpush3.bf16.msra.mxu0 %v208_v3 }
  0x3c   :  { %213 = vmatprep.subr.bf16.mxu0 %v212_v6  ;;  %p295_p13 = por %p294_p12, %p293_p11 }
  0x3e   :  { %p296_p0 = pnand %p295_p13, %p289_p10 }
  0x3f   :  { %215 = vmatpush3.bf16.msra.mxu0 %v212_v6 }
  0x42   :  { %206 = vmatmul.mubr.msk.f32.vlgmr.msra.gmra.mrb[0].mxu0 %vm68_vm0, %v63_v7 }
 0x115   :  { %v207_v9 = vpop.f32.mrb[0].mxu0 }
 0x116   :  { %v167_v10 = vadd.f32 %v207_v9, %v190_v8  ;;  %v141_v11 = vpop.f32.mrb[1].mxu0 }
 0x117   :  { %v166_v12 = vadd.f32 %v190_v8, %v141_v11 }
 0x118   :  { %169 = vst [vmem:[#allocation9 + $0x8] sm:$0xff] %v167_v10 }
 0x119   :  { %168 = vst [vmem:[#allocation9] sm:$0xff] %v166_v12 }
 0x11a   :  { %299 = shalt.err (!%p296_p0)
}
 0x11b   :  { %s300_s28 = scalar_lea.hbm %s409_s3, 256 }
 0x11c   :  { %p301_p1 = scmp.ne.s32.totalorder %s409_s3, %s300_s28  ;;  %p304_p2 = scmp.lt.u32.totalorder %s300_s28, %s409_s3 }
 0x11e   :  { %p306_p3 = pnand %p304_p2, %p301_p1 }
 0x120   :  { %309 = shalt.err (!%p306_p3)
}
 0x121   :  { %181 = dma.vmem_to_hbm [thread:$0]  %s176_s22, 256, %s409_s3, [#allocation5], %s318_s24, %s318_s24, %s319_s25  }
 0x122   :  { %314 = dma.done.wait [#allocation5], 256  }
 0x123   :  { %315 = vsyncadd [#allocation5], 4294967040 }
 0x124   :  { %185 = vsyncpa [#allocation4], 1 }
 0x125   :  { %186 = vsyncpa [#allocation7], 1 }
 0x126   :  { %187 = vsyncpa [#allocation5], 1 }

// kernel: decoder_only_forward.17
= control target key start
LH: loop header
LB: loop body
LE: loop exit
PB: predicated region body
PF: predicated region fallthrough
CT: control target
= control target key end

     0   :  { %11 = vsyncpa [#allocation4], 0  ;;  %s716_s0 = inlined_call_operand.hbm [shape: f32[16,128], index: 0, kind: input, shape index: {}]   ;;  %s717_s1 = inlined_call_operand.hbm [shape: f32[128,32], index: 1, kind: input, shape index: {}]   ;;  %s718_s2 = inlined_call_operand.hbm [shape: f32[1,32], index: 2, kind: input, shape index: {}]   ;;  %s719_s3 = inlined_call_operand.hbm [shape: f32[16,32], index: 3, kind: input, shape index: {}]   ;;  %s720_s4 = inlined_call_operand.hbm [shape: f32[1,32], index: 4, kind: input, shape index: {}]   ;;  %s721_s5 = inlined_call_operand.hbm [shape: f32[1,32], index: 5, kind: input, shape index: {}]   ;;  %s722_s6 = inlined_call_operand.hbm [shape: f32[16,32], index: 6, kind: output, shape index: {}]  }
   0x1   :  { %12 = vsyncpa [#allocation7], 0 }
   0x2   :  { %13 = vsyncpa [#allocation10], 0 }
   0x3   :  { %14 = vsyncpa [#allocation13], 0 }
   0x4   :  { %15 = vsyncpa [#allocation5], 0  ;;  %s558_s21 = smov [#allocation6]   ;;  %s559_s23 = smov [#allocation9]  }
   0x5   :  { %s33_s22 = sshll.u32 %s558_s21, 4  ;;  %s55_s24 = sshll.u32 %s559_s23, 4  ;;  %s34_s22 = int_to_ptr.vmem [resolvable:$true] %s33_s22  ;;  %s603_s24 = int_to_ptr.vmem [resolvable:$true] %s55_s24 }
   0x6   :  { %s394_s27 = scalar_lea.hbm %s717_s1, 2048 }
   0x7   :  { %p395_p0 = scmp.ne.s32.totalorder %s717_s1, %s394_s27  ;;  %p398_p1 = scmp.lt.u32.totalorder %s394_s27, %s717_s1 }
   0x9   :  { %p400_p2 = pnand %p398_p1, %p395_p0 }
   0xb   :  { %403 = shalt.err (!%p400_p2)
}
   0xc   :  { %s404_s8 = scalar_lea.vmem %s34_s22, 2048  ;;  %p409_p4 = scmp.lt.s32.totalorder %s34_s22, %s34_s22 }
   0xd   :  { %p405_p3 = scmp.ne.s32.totalorder %s34_s22, %s404_s8  ;;  %p410_p5 = scmp.lt.s32.totalorder %s404_s8, %s404_s8 }
   0xf   :  { %p411_p6 = por %p410_p5, %p409_p4 }
  0x11   :  { %p412_p7 = pnand %p411_p6, %p405_p3 }
  0x13   :  { %415 = shalt.err (!%p412_p7)
}
  0x14   :  { %s560_s9 = smov 128   ;;  %s561_s10 = smov 8  }
  0x15   :  { %39 = dma.hbm_to_vmem [thread:$0]  %s717_s1, 2048, %s34_s22, [#allocation7], %s560_s9, %s560_s9, %s561_s10  }
  0x16   :  { %s416_s15 = scalar_lea.hbm %s719_s3, 256 }
  0x17   :  { %p417_p8 = scmp.ne.s32.totalorder %s719_s3, %s416_s15  ;;  %p420_p9 = scmp.lt.u32.totalorder %s416_s15, %s719_s3 }
  0x19   :  { %p422_p10 = pnand %p420_p9, %p417_p8 }
  0x1b   :  { %425 = shalt.err (!%p422_p10)
}
  0x1c   :  { %s426_s20 = scalar_lea.vmem %s603_s24, 256  ;;  %p431_p12 = scmp.lt.s32.totalorder %s603_s24, %s603_s24 }
  0x1d   :  { %p427_p11 = scmp.ne.s32.totalorder %s603_s24, %s426_s20  ;;  %p432_p13 = scmp.lt.s32.totalorder %s426_s20, %s426_s20 }
  0x1f   :  { %p433_p0 = por %p432_p13, %p431_p12 }
  0x21   :  { %p434_p1 = pnand %p433_p0, %p427_p11 }
  0x23   :  { %437 = shalt.err (!%p434_p1)
}
  0x24   :  { %61 = dma.hbm_to_vmem [thread:$0]  %s719_s3, 256, %s603_s24, [#allocation10], %s560_s9, %s560_s9, %s561_s10  }
  0x25   :  { %s562_s22 = smov [#allocation3]   ;;  %s563_s25 = smov [#allocation8]  }
  0x26   :  { %s21_s23 = sshll.u32 %s562_s22, 4  ;;  %s46_s26 = sshll.u32 %s563_s25, 4  ;;  %s22_s23 = int_to_ptr.vmem [resolvable:$true] %s21_s23  ;;  %s47_s26 = int_to_ptr.vmem [resolvable:$true] %s46_s26 }
  0x27   :  { %s438_s29 = scalar_lea.hbm %s716_s0, 256 }
  0x28   :  { %p439_p2 = scmp.ne.s32.totalorder %s716_s0, %s438_s29  ;;  %p442_p3 = scmp.lt.u32.totalorder %s438_s29, %s716_s0 }
  0x2a   :  { %p444_p4 = pnand %p442_p3, %p439_p2 }
  0x2c   :  { %447 = shalt.err (!%p444_p4)
}
  0x2d   :  { %s448_s3 = scalar_lea.vmem %s22_s23, 256  ;;  %p453_p6 = scmp.lt.s32.totalorder %s22_s23, %s22_s23 }
  0x2e   :  { %p449_p5 = scmp.ne.s32.totalorder %s22_s23, %s448_s3  ;;  %p454_p7 = scmp.lt.s32.totalorder %s448_s3, %s448_s3 }
  0x30   :  { %p455_p8 = por %p454_p7, %p453_p6 }
  0x32   :  { %p456_p9 = pnand %p455_p8, %p449_p5 }
  0x34   :  { %459 = shalt.err (!%p456_p9)
}
  0x35   :  { %27 = dma.hbm_to_vmem [thread:$0]  %s716_s0, 256, %s22_s23, [#allocation4], %s560_s9, %s560_s9, %s561_s10  }
  0x36   :  { %s460_s15 = scalar_lea.hbm %s718_s2, 16 }
  0x37   :  { %p461_p10 = scmp.ne.s32.totalorder %s718_s2, %s460_s15  ;;  %p464_p11 = scmp.lt.u32.totalorder %s460_s15, %s718_s2 }
  0x39   :  { %p466_p12 = pnand %p464_p11, %p461_p10 }
  0x3b   :  { %469 = shalt.err (!%p466_p12)
}
  0x3c   :  { %s470_s20 = scalar_lea.vmem %s47_s26, 16  ;;  %s474_s1 = scalar_lea.vmem %s47_s26, 32 }
  0x3d   :  { %p471_p13 = scmp.ne.s32.totalorder %s47_s26, %s470_s20  ;;  %p475_p0 = scmp.lt.s32.totalorder %s47_s26, %s47_s26 }
  0x3e   :  { %p476_p1 = scmp.lt.s32.totalorder %s474_s1, %s470_s20 }
  0x40   :  { %p477_p2 = por %p476_p1, %p475_p0 }
  0x42   :  { %p478_p3 = pnand %p477_p2, %p471_p13 }
  0x44   :  { %481 = shalt.err (!%p478_p3)
}
  0x45   :  { %49 = dma.hbm_to_vmem [thread:$0]  %s718_s2, 16, %s47_s26, [#allocation7]  }
  0x46   :  { %s564_s22 = smov [#allocation11]   ;;  %s565_s25 = smov [#allocation12]  }
  0x47   :  { %s68_s23 = sshll.u32 %s564_s22, 4  ;;  %s78_s27 = sshll.u32 %s565_s25, 4  ;;  %s69_s23 = int_to_ptr.vmem [resolvable:$true] %s68_s23  ;;  %s79_s27 = int_to_ptr.vmem [resolvable:$true] %s78_s27 }
  0x48   :  { %s482_s30 = scalar_lea.hbm %s720_s4, 16 }
  0x49   :  { %p483_p4 = scmp.ne.s32.totalorder %s720_s4, %s482_s30  ;;  %p486_p5 = scmp.lt.u32.totalorder %s482_s30, %s720_s4 }
  0x4b   :  { %p488_p6 = pnand %p486_p5, %p483_p4 }
  0x4d   :  { %491 = shalt.err (!%p488_p6)
}
  0x4e   :  { %s492_s2 = scalar_lea.vmem %s69_s23, 16  ;;  %s496_s26 = scalar_lea.vmem %s69_s23, 32 }
  0x4f   :  { %p493_p7 = scmp.ne.s32.totalorder %s69_s23, %s492_s2  ;;  %p497_p8 = scmp.lt.s32.totalorder %s69_s23, %s69_s23 }
  0x50   :  { %p498_p9 = scmp.lt.s32.totalorder %s496_s26, %s492_s2 }
  0x52   :  { %p499_p10 = por %p498_p9, %p497_p8 }
  0x54   :  { %p500_p11 = pnand %p499_p10, %p493_p7 }
  0x56   :  { %503 = shalt.err (!%p500_p11)
}
  0x57   :  { %71 = dma.hbm_to_vmem [thread:$0]  %s720_s4, 16, %s69_s23, [#allocation10]  }
  0x58   :  { %s504_s15 = scalar_lea.hbm %s721_s5, 16 }
  0x59   :  { %p505_p12 = scmp.ne.s32.totalorder %s721_s5, %s504_s15  ;;  %p508_p13 = scmp.lt.u32.totalorder %s504_s15, %s721_s5 }
  0x5b   :  { %p510_p0 = pnand %p508_p13, %p505_p12 }
  0x5d   :  { %513 = shalt.err (!%p510_p0)
}
  0x5e   :  { %s514_s20 = scalar_lea.vmem %s79_s27, 16  ;;  %s518_s1 = scalar_lea.vmem %s79_s27, 32 }
  0x5f   :  { %p515_p1 = scmp.ne.s32.totalorder %s79_s27, %s514_s20  ;;  %p519_p2 = scmp.lt.s32.totalorder %s79_s27, %s79_s27 }
  0x60   :  { %p520_p3 = scmp.lt.s32.totalorder %s518_s1, %s514_s20 }
  0x62   :  { %p521_p4 = por %p520_p3, %p519_p2 }
  0x64   :  { %p522_p5 = pnand %p521_p4, %p515_p1 }
  0x66   :  { %525 = shalt.err (!%p522_p5)
}
  0x67   :  { %81 = dma.hbm_to_vmem [thread:$0]  %s721_s5, 16, %s79_s27, [#allocation13]  }
  0x68   :  { %548 = dma.done.wait [#allocation4], 256  }
  0x69   :  { %549 = vsyncadd [#allocation4], 4294967040 }
  0x6a   :  { %550 = dma.done.wait [#allocation7], 2064  }
  0x6b   :  { %551 = vsyncadd [#allocation7], 4294965232 }
  0x6c   :  { %552 = dma.done.wait [#allocation10], 272  }
  0x6d   :  { %553 = vsyncadd [#allocation10], 4294967024 }
  0x6e   :  { %554 = dma.done.wait [#allocation13], 16  }
  0x6f   :  { %555 = vsyncadd [#allocation13], 4294967280  ;;  %vm104_vm0 = vcmask 261120   ;;  %v566_v0 = vmov 0.0   ;;  %v111_v1 = vld [vmem:[#allocation6] sm:$0xff]  ;;  %v112_v2 = vld [vmem:[#allocation6 + $0x8] sm:$0xff] }
  0x70   :  { %106 = vst.msk [vmem:[#allocation2 + $0x8] sm:$0xff] %vm104_vm0, %v566_v0  ;;  %105 = vst.msk [vmem:[#allocation2] sm:$0xff] %vm104_vm0, %v566_v0  ;;  %v113_v3 = vld [vmem:[#allocation6 + $0x10] sm:$0xff]  ;;  %v348_v4 = vpack.c.bf16 %v112_v2, %v111_v1  ;;  %v114_v5 = vld [vmem:[#allocation6 + $0x18] sm:$0xff]  ;;  %s567_s5 = smov [#allocation14]  }
  0x71   :  { %v352_v6 = vpack.c.bf16 %v114_v5, %v113_v3  ;;  %v115_v7 = vld [vmem:[#allocation6 + $0x20] sm:$0xff]  ;;  %v116_v8 = vld [vmem:[#allocation6 + $0x28] sm:$0xff]  ;;  %v109_v10 = vld [vmem:[#allocation3] sm:$0xff]  ;;  %s277_s21 = sshll.u32 %s567_s5, 4  ;;  %s278_s21 = int_to_ptr.vmem [resolvable:$true] %s277_s21 }
  0x72   :  { %349 = vmatprep.subr.bf16.mxu0 %v348_v4  ;;  %v356_v9 = vpack.c.bf16 %v116_v8, %v115_v7  ;;  %v117_v11 = vld [vmem:[#allocation6 + $0x30] sm:$0xff]  ;;  %v118_v12 = vld [vmem:[#allocation6 + $0x38] sm:$0xff]  ;;  %345 = vmatprep.mubr.f32.mxu0 %v109_v10  ;;  %v119_v14 = vld [vmem:[#allocation6 + $0x40] sm:$0xff]  ;;  %s526_s22 = scalar_lea.vmem %s278_s21, 256  ;;  %p531_p7 = scmp.lt.s32.totalorder %s278_s21, %s278_s21 }
  0x73   :  { %351 = vmatpush3.bf16.msra.mxu0 %v348_v4  ;;  %v360_v13 = vpack.c.bf16 %v118_v12, %v117_v11  ;;  %v120_v15 = vld [vmem:[#allocation6 + $0x48] sm:$0xff]  ;;  %v121_v17 = vld [vmem:[#allocation6 + $0x50] sm:$0xff]  ;;  %v122_v18 = vld [vmem:[#allocation6 + $0x58] sm:$0xff]  ;;  %p527_p6 = scmp.ne.s32.totalorder %s278_s21, %s526_s22  ;;  %p532_p8 = scmp.lt.s32.totalorder %s526_s22, %s526_s22 }
  0x74   :  { %353 = vmatprep.subr.bf16.mxu0 %v352_v6  ;;  %v364_v16 = vpack.c.bf16 %v120_v15, %v119_v14  ;;  %v368_v19 = vpack.c.bf16 %v122_v18, %v121_v17  ;;  %v123_v20 = vld [vmem:[#allocation6 + $0x60] sm:$0xff]  ;;  %v124_v21 = vld [vmem:[#allocation6 + $0x68] sm:$0xff]  ;;  %v125_v23 = vld [vmem:[#allocation6 + $0x70] sm:$0xff] }
  0x75   :  { %v372_v22 = vpack.c.bf16 %v124_v21, %v123_v20  ;;  %v126_v24 = vld [vmem:[#allocation6 + $0x78] sm:$0xff]  ;;  %v292_v33 = vld [vmem:[#allocation8] ss:$0 sm:$0xff]  ;;  %v293_v57 = vld [vmem:[#allocation11] ss:$0 sm:$0xff]  ;;  %p533_p9 = por %p532_p8, %p531_p7 }
  0x76   :  { %v376_v25 = vpack.c.bf16 %v126_v24, %v125_v23  ;;  %v110_v26 = vld [vmem:[#allocation3 + $0x8] sm:$0xff]  ;;  %v248_v59 = vld [vmem:[#allocation9] sm:$0xff]  ;;  %v294_v62 = vld [vmem:[#allocation12] ss:$0 sm:$0xff] }
  0x77   :  { %355 = vmatpush3.bf16.msra.mxu0 %v352_v6  ;;  %v108_v27 = vld [vmem:[#allocation2 + $0x8] sm:$0xff]  ;;  %v107_v28 = vld [vmem:[#allocation2] sm:$0xff]  ;;  %p534_p10 = pnand %p533_p9, %p527_p6 }
  0x78   :  { %357 = vmatprep.subr.bf16.mxu0 %v356_v9  ;;  %v249_v1 = vld [vmem:[#allocation9 + $0x8] sm:$0xff] }
  0x7b   :  { %359 = vmatpush3.bf16.msra.mxu0 %v356_v9 }
  0x7c   :  { %361 = vmatprep.subr.bf16.mxu0 %v360_v13 }
  0x7f   :  { %363 = vmatpush3.bf16.msra.mxu0 %v360_v13 }
  0x80   :  { %365 = vmatprep.subr.bf16.mxu0 %v364_v16 }
  0x83   :  { %367 = vmatpush3.bf16.msra.mxu0 %v364_v16 }
  0x84   :  { %369 = vmatprep.subr.bf16.mxu0 %v368_v19 }
  0x87   :  { %371 = vmatpush3.bf16.msra.mxu0 %v368_v19 }
  0x88   :  { %373 = vmatprep.subr.bf16.mxu0 %v372_v22 }
  0x8b   :  { %375 = vmatpush3.bf16.msra.mxu0 %v372_v22 }
  0x8c   :  { %377 = vmatprep.subr.bf16.mxu0 %v376_v25 }
  0x8f   :  { %379 = vmatpush3.bf16.msra.mxu0 %v376_v25 }
  0x92   :  { %346 = vmatmul.mubr.f32.vlgmr.msra.gmra.mrb[0].mxu0 %v110_v26 }
 0x165   :  { %v347_v29 = vpop.f32.mrb[0].mxu0 }
 0x166   :  { %v203_v30 = vadd.f32 %v347_v29, %v108_v27  ;;  %v193_v31 = vpop.f32.mrb[1].mxu0 }
 0x167   :  { %v202_v32 = vadd.f32 %v193_v31, %v107_v28 }
 0x168   :  { %206 = vst.msk [vmem:[#allocation2 + $0x8] sm:$0xff] %vm104_vm0, %v203_v30 }
 0x169   :  { %205 = vst.msk [vmem:[#allocation2] sm:$0xff] %vm104_vm0, %v202_v32 }
 0x16f   :  { %v211_v35 = vld [vmem:[#allocation2 + $0x8] sm:$0xff] }
 0x170   :  { %v210_v34 = vld [vmem:[#allocation2] sm:$0xff]  ;;  %v220_v38 = vadd.f32 %v292_v33, %v211_v35 }
 0x171   :  { %v219_v36 = vadd.f32 %v292_v33, %v210_v34 }
 0x172   :  { %v224_v39 = vsel %vm104_vm0, %v220_v38, 0.0 }
 0x173   :  { %v221_v37 = vsel %vm104_vm0, %v219_v36, 0.0 }
 0x174   :  { %222 = vadd.xlane.f32.xlu0 %v221_v37 }
 0x178   :  { %225 = vadd.xlane.f32.xlu0 %v224_v39 }
 0x201   :  { %v223_v40 = vpop.xlane.xlu0 %222 }
 0x202   :  { %v228_v41 = vmul.f32 0.03125, %v223_v40 }
 0x204   :  { %v230_v42 = vsub.f32 %v219_v36, %v228_v41 }
 0x205   :  { %v226_v43 = vpop.xlane.xlu0 %225 }
 0x206   :  { %v229_v44 = vmul.f32 0.03125, %v226_v43  ;;  %v232_v45 = vmul.f32 %v230_v42, %v230_v42 }
 0x208   :  { %v231_v46 = vsub.f32 %v220_v38, %v229_v44  ;;  %v234_v47 = vsel %vm104_vm0, %v232_v45, 0.0 }
 0x209   :  { %235 = vadd.xlane.f32.xlu1 %v234_v47 }
 0x20a   :  { %v233_v48 = vmul.f32 %v231_v46, %v231_v46 }
 0x20c   :  { %v237_v49 = vsel %vm104_vm0, %v233_v48, 0.0 }
 0x20d   :  { %238 = vadd.xlane.f32.xlu1 %v237_v49 }
 0x296   :  { %v236_v50 = vpop.xlane.xlu1 %235 }
 0x297   :  { %v240_v51 = vmul.f32 0.03125, %v236_v50 }
 0x299   :  { %v242_v52 = vadd.f32 1e-05, %v240_v51 }
 0x29a   :  { %v239_v53 = vpop.xlane.xlu1 %238 }
 0x29b   :  { %390 = vrsqrt.f32 %v242_v52  ;;  %v241_v54 = vmul.f32 0.03125, %v239_v53 }
 0x29d   :  { %v243_v55 = vadd.f32 1e-05, %v241_v54 }
 0x29f   :  { %392 = vrsqrt.f32 %v243_v55 }
 0x2a5   :  { %v391_v56 = vpop.eup %390 }
 0x2a6   :  { %v246_v58 = vmul.f32 %v391_v56, %v230_v42 }
 0x2a8   :  { %v257_v60 = vmul.f32 %v293_v57, %v246_v58 }
 0x2a9   :  { %v393_v61 = vpop.eup %392 }
 0x2aa   :  { %v247_v63 = vmul.f32 %v393_v61, %v231_v46  ;;  %v259_v0 = vadd.f32 %v257_v60, %v248_v59 }
 0x2ac   :  { %v258_v2 = vmul.f32 %v293_v57, %v247_v63  ;;  %v268_v3 = vadd.f32 %v294_v62, %v259_v0 }
 0x2ae   :  { %v260_v4 = vadd.f32 %v258_v2, %v249_v1  ;;  %270 = vst.msk [vmem:[#allocation14] sm:$0xff] %vm104_vm0, %v268_v3 }
 0x2b0   :  { %v269_v5 = vadd.f32 %v294_v62, %v260_v4 }
 0x2b2   :  { %271 = vst.msk [vmem:[#allocation14 + $0x8] sm:$0xff] %vm104_vm0, %v269_v5 }
 0x2b3   :  { %537 = shalt.err (!%p534_p10)
}
 0x2b4   :  { %s538_s27 = scalar_lea.hbm %s722_s6, 256 }
 0x2b5   :  { %p539_p11 = scmp.ne.s32.totalorder %s722_s6, %s538_s27  ;;  %p542_p12 = scmp.lt.u32.totalorder %s538_s27, %s722_s6 }
 0x2b7   :  { %p544_p13 = pnand %p542_p12, %p539_p11 }
 0x2b9   :  { %547 = shalt.err (!%p544_p13)
}
 0x2ba   :  { %283 = dma.vmem_to_hbm [thread:$0]  %s278_s21, 256, %s722_s6, [#allocation5], %s560_s9, %s560_s9, %s561_s10  }
 0x2bb   :  { %556 = dma.done.wait [#allocation5], 256  }
 0x2bc   :  { %557 = vsyncadd [#allocation5], 4294967040 }
 0x2bd   :  { %287 = vsyncpa [#allocation4], 1 }
 0x2be   :  { %288 = vsyncpa [#allocation7], 1 }
 0x2bf   :  { %289 = vsyncpa [#allocation10], 1 }
 0x2c0   :  { %290 = vsyncpa [#allocation13], 1 }
 0x2c1   :  { %291 = vsyncpa [#allocation5], 1 }

</bundles_post_ra>
